<compile_context>
chip_gen: v7x
topology: tpu7x:2x2x1
jax: 0.10.0
libtpu: 0.0.40
codegen_flags: <defaults>
</compile_context>

<pallas_src>
import jax
import jax.numpy as jnp
from jax.experimental import pallas as pl
from jax.experimental.pallas import tpu as pltpu

EPS = 1e-5   # nn.InstanceNorm3d default eps
K = 3        # kernel_size
P = K - 1    # zero padding of the equivalent direct convolution


def _make_kernel(tap_offsets, out_window, n_valid):
    inv_n = 1.0 / float(n_valid)

    def kernel(x_ref, w_ref, b_ref, m_ref, a_ref, o_ref):
        # x_ref: (Cin, Lp)       zero-padded input, spatial dims flattened (lane-dense)
        # w_ref: (Cout, 27*Cin)  flipped + transposed ConvTranspose3d weight
        # b_ref: (Cout, 1)       conv bias (f32)
        # m_ref: (1, Mw)         1.0 where the flat column is a real output position
        # a_ref: (1,)            PReLU alpha, in SMEM
        # o_ref: (Cout, Mw)      output in padded-stride flat layout
        rows = [x_ref[:, s:s + out_window] for s in tap_offsets]   # 27 x (Cin, Mw)
        lhs = jnp.stack(rows, axis=0)                              # (27, Cin, Mw)
        lhs = lhs.reshape(-1, out_window)                          # (27*Cin, Mw)

        # Single fused MXU matmul: 108-deep contraction, lane-dense result, f32 accumulate.
        acc = jnp.dot(w_ref[...], lhs, preferred_element_type=jnp.float32)
        acc = acc + b_ref[...].astype(jnp.float32)                 # conv bias

        alpha = a_ref[0].astype(jnp.float32)                       # PReLU (single shared alpha)
        acc = jnp.where(acc >= 0.0, acc, alpha * acc)

        # Dropout(p=0.1): identity in eval mode.
        # TODO(synk): training-mode dropout (stateful PRNG mask) not emitted here.

        # InstanceNorm3d (affine=False): per-channel biased stats over the valid output
        # positions only, computed in one pass (sum + sum of squares).
        mask = m_ref[...].astype(jnp.float32)                      # (1, Mw)
        accm = acc * mask
        s1 = jnp.sum(accm, axis=-1, keepdims=True)                 # (Cout, 1)
        s2 = jnp.sum(accm * accm, axis=-1, keepdims=True)
        mean = s1 * inv_n
        var = jnp.maximum(s2 * inv_n - mean * mean, 0.0)
        y = (acc - mean) * jax.lax.rsqrt(var + EPS)

        o_ref[...] = y.astype(o_ref.dtype)

    return kernel


@jax.jit
def single_conv_block_transposed(x, weight, bias, alpha):
    """Eval-mode forward of SingleConvBlockTransposed.

    x:      (N, Cin, D, H, W)      NCDHW, like the PyTorch module
    weight: (Cin, Cout, K, K, K)   nn.ConvTranspose3d weight layout
    bias:   (Cout,)
    alpha:  scalar                 nn.PReLU shared parameter
    returns (N, Cout, D+2, H+2, W+2) NCDHW
    """
    N, Cin, D, H, W = x.shape
    Cout = weight.shape[1]
    Do, Ho, Wo = D + K - 1, H + K - 1, W + K - 1
    Hp, Wp = H + 2 * P, W + 2 * P
    Dz = D + 2 * P + 1          # one extra zero plane so every tap slice stays in bounds
    Lp = Dz * Hp * Wp
    Mw = Do * Hp * Wp           # padded-stride output window (includes garbage columns)

    # ConvTranspose3d == direct conv on (K-1)-padded input with flipped taps:
    #   W_eff[co, kd, kh, kw, ci] = weight[ci, co, K-1-kd, K-1-kh, K-1-kw]
    w_eff = jnp.transpose(jnp.flip(weight, axis=(2, 3, 4)), (1, 2, 3, 4, 0))
    w_mat = w_eff.reshape(Cout, K * K * K * Cin).astype(x.dtype)

    b_col = bias.reshape(Cout, 1).astype(jnp.float32)
    a_arr = jnp.asarray(alpha, jnp.float32).reshape(1)

    # Zero-pad and flatten the spatial dims onto the lane axis (kept NCDHW-ordered).
    x_pad = jnp.pad(x, ((0, 0), (0, 0), (P, P + 1), (P, P), (P, P)))
    x_flat = x_pad.reshape(N, Cin, Lp)

    # 0/1 mask of real output columns inside the padded-stride window.
    col = jnp.arange(Mw, dtype=jnp.int32)
    mask = ((col % Wp < Wo) & ((col // Wp) % Hp < Ho)).astype(jnp.float32).reshape(1, Mw)

    tap_offsets = tuple(kd * Hp * Wp + kh * Wp + kw
                        for kd in range(K) for kh in range(K) for kw in range(K))
    kernel = _make_kernel(tap_offsets, Mw, Do * Ho * Wo)

    out_flat = pl.pallas_call(
        kernel,
        out_shape=jax.ShapeDtypeStruct((N, Cout, Mw), x.dtype),
        grid_spec=pltpu.PrefetchScalarGridSpec(
            num_scalar_prefetch=0,
            grid=(N,),
            in_specs=[
                pl.BlockSpec((None, Cin, Lp), lambda n: (n, 0, 0)),
                pl.BlockSpec((Cout, K * K * K * Cin), lambda n: (0, 0)),
                pl.BlockSpec((Cout, 1), lambda n: (0, 0)),
                pl.BlockSpec((1, Mw), lambda n: (0, 0)),
                pl.BlockSpec(memory_space=pltpu.MemorySpace.SMEM),
            ],
            out_specs=pl.BlockSpec((None, Cout, Mw), lambda n: (n, 0, 0)),
        ),
        compiler_params=pltpu.CompilerParams(
            dimension_semantics=("parallel",),
            vmem_limit_bytes=32 * 1024 * 1024,
        ),
    )(x_flat, w_mat, b_col, mask, a_arr)

    # Drop the stride-garbage columns; the result is already in NCDHW order.
    # TODO(synk): for large volumes, tile Do (2-plane halo) and carry running sum/sumsq
    #             for InstanceNorm instead of a full volume per batch per grid step.
    out = out_flat.reshape(N, Cout, Do, Hp, Wp)[:, :, :, :Ho, :Wo]
    return out


if __name__ == "__main__":
    key = jax.random.PRNGKey(0)
    k_x, k_w, k_b = jax.random.split(key, 3)

    N, Cin, Cout = 2, 4, 8
    D = H = W = 8

    x = jax.random.normal(k_x, (N, Cin, D, H, W), jnp.float32)
    # nn.ConvTranspose3d(Cin, Cout, 3) parameter shapes: weight (Cin, Cout, 3, 3, 3)
    weight = 0.1 * jax.random.normal(k_w, (Cin, Cout, K, K, K), jnp.float32)
    bias = 0.1 * jax.random.normal(k_b, (Cout,), jnp.float32)
    alpha = 0.25  # nn.PReLU() default init

    y = single_conv_block_transposed(x, weight, bias, alpha)
    y = jax.block_until_ready(y)

    assert y.shape == (N, Cout, D + 2, H + 2, W + 2), y.shape
    assert bool(jnp.all(jnp.isfinite(y)))

    # Pure-JAX reference of the same eval-mode composition (sanity check).
    w_dir = jnp.transpose(jnp.flip(weight, axis=(2, 3, 4)), (1, 0, 2, 3, 4))
    ref = jax.lax.conv_general_dilated(
        x, w_dir, window_strides=(1, 1, 1), padding=[(P, P)] * 3,
        dimension_numbers=("NCDHW", "OIDHW", "NCDHW"),
        precision=jax.lax.Precision.HIGHEST)
    ref = ref + bias.reshape(1, Cout, 1, 1, 1)
    ref = jnp.where(ref >= 0, ref, alpha * ref)
    mu = jnp.mean(ref, axis=(2, 3, 4), keepdims=True)
    var = jnp.mean((ref - mu) ** 2, axis=(2, 3, 4), keepdims=True)
    ref = (ref - mu) * jax.lax.rsqrt(var + EPS)

    err = float(jnp.max(jnp.abs(y - ref)))
    assert err < 5e-2, f"max abs error vs reference: {err}"

    print("KERNEL_OK")
</pallas_src>

<mosaic_0001>
module attributes {stable_mosaic.version = 11 : i64} {
  func.func @kernel(%arg0: i32, %arg1: memref<1x4x1872xf32, #tpu.memory_space<vmem>>, %arg2: memref<8x108xf32, #tpu.memory_space<vmem>>, %arg3: memref<8x1xf32, #tpu.memory_space<vmem>>, %arg4: memref<1x1440xf32, #tpu.memory_space<vmem>>, %arg5: memref<1xf32, #tpu.memory_space<smem>>, %arg6: memref<1x8x1440xf32, #tpu.memory_space<vmem>>) attributes {dimension_semantics = [#tpu.dimension_semantics<parallel>], iteration_bounds = array<i64: 2>, scalar_prefetch = 0 : i64, scratch_operands = 0 : i64, tpu.core_type = #tpu.core_type<tc>, window_params = [{transform_indices = @transform_0, window_bounds = array<i64: 1, 4, 1872>}, {pipeline_mode = #tpu.pipeline_mode<synchronous>, transform_indices = @transform_1, window_bounds = array<i64: 8, 108>}, {pipeline_mode = #tpu.pipeline_mode<synchronous>, transform_indices = @transform_2, window_bounds = array<i64: 8, 1>}, {pipeline_mode = #tpu.pipeline_mode<synchronous>, transform_indices = @transform_3, window_bounds = array<i64: 1, 1440>}, {transform_indices = @transform_4, window_bounds = array<i64: 1>}, {transform_indices = @transform_5, window_bounds = array<i64: 1, 8, 1440>}]} {
    %c0 = arith.constant 0 : index
    %c0_0 = arith.constant 0 : index
    %c0_1 = arith.constant 0 : index
    %0 = vector.load %arg1[%c0, %c0_0, %c0_1] : memref<1x4x1872xf32, #tpu.memory_space<vmem>>, vector<1x4x1440xf32>
    %1 = vector.shape_cast %0 : vector<1x4x1440xf32> to vector<4x1440xf32>
    %c0_2 = arith.constant 0 : index
    %c0_3 = arith.constant 0 : index
    %c1 = arith.constant 1 : index
    %2 = vector.load %arg1[%c0_2, %c0_3, %c1] : memref<1x4x1872xf32, #tpu.memory_space<vmem>>, vector<1x4x1440xf32>
    %3 = vector.shape_cast %2 : vector<1x4x1440xf32> to vector<4x1440xf32>
    %c0_4 = arith.constant 0 : index
    %c0_5 = arith.constant 0 : index
    %c2 = arith.constant 2 : index
    %4 = vector.load %arg1[%c0_4, %c0_5, %c2] : memref<1x4x1872xf32, #tpu.memory_space<vmem>>, vector<1x4x1440xf32>
    %5 = vector.shape_cast %4 : vector<1x4x1440xf32> to vector<4x1440xf32>
    %c0_6 = arith.constant 0 : index
    %c0_7 = arith.constant 0 : index
    %c12 = arith.constant 12 : index
    %6 = vector.load %arg1[%c0_6, %c0_7, %c12] : memref<1x4x1872xf32, #tpu.memory_space<vmem>>, vector<1x4x1440xf32>
    %7 = vector.shape_cast %6 : vector<1x4x1440xf32> to vector<4x1440xf32>
    %c0_8 = arith.constant 0 : index
    %c0_9 = arith.constant 0 : index
    %c13 = arith.constant 13 : index
    %8 = vector.load %arg1[%c0_8, %c0_9, %c13] : memref<1x4x1872xf32, #tpu.memory_space<vmem>>, vector<1x4x1440xf32>
    %9 = vector.shape_cast %8 : vector<1x4x1440xf32> to vector<4x1440xf32>
    %c0_10 = arith.constant 0 : index
    %c0_11 = arith.constant 0 : index
    %c14 = arith.constant 14 : index
    %10 = vector.load %arg1[%c0_10, %c0_11, %c14] : memref<1x4x1872xf32, #tpu.memory_space<vmem>>, vector<1x4x1440xf32>
    %11 = vector.shape_cast %10 : vector<1x4x1440xf32> to vector<4x1440xf32>
    %c0_12 = arith.constant 0 : index
    %c0_13 = arith.constant 0 : index
    %c24 = arith.constant 24 : index
    %12 = vector.load %arg1[%c0_12, %c0_13, %c24] : memref<1x4x1872xf32, #tpu.memory_space<vmem>>, vector<1x4x1440xf32>
    %13 = vector.shape_cast %12 : vector<1x4x1440xf32> to vector<4x1440xf32>
    %c0_14 = arith.constant 0 : index
    %c0_15 = arith.constant 0 : index
    %c25 = arith.constant 25 : index
    %14 = vector.load %arg1[%c0_14, %c0_15, %c25] : memref<1x4x1872xf32, #tpu.memory_space<vmem>>, vector<1x4x1440xf32>
    %15 = vector.shape_cast %14 : vector<1x4x1440xf32> to vector<4x1440xf32>
    %c0_16 = arith.constant 0 : index
    %c0_17 = arith.constant 0 : index
    %c26 = arith.constant 26 : index
    %16 = vector.load %arg1[%c0_16, %c0_17, %c26] : memref<1x4x1872xf32, #tpu.memory_space<vmem>>, vector<1x4x1440xf32>
    %17 = vector.shape_cast %16 : vector<1x4x1440xf32> to vector<4x1440xf32>
    %c0_18 = arith.constant 0 : index
    %c0_19 = arith.constant 0 : index
    %c144 = arith.constant 144 : index
    %18 = vector.load %arg1[%c0_18, %c0_19, %c144] : memref<1x4x1872xf32, #tpu.memory_space<vmem>>, vector<1x4x1440xf32>
    %19 = vector.shape_cast %18 : vector<1x4x1440xf32> to vector<4x1440xf32>
    %c0_20 = arith.constant 0 : index
    %c0_21 = arith.constant 0 : index
    %c145 = arith.constant 145 : index
    %20 = vector.load %arg1[%c0_20, %c0_21, %c145] : memref<1x4x1872xf32, #tpu.memory_space<vmem>>, vector<1x4x1440xf32>
    %21 = vector.shape_cast %20 : vector<1x4x1440xf32> to vector<4x1440xf32>
    %c0_22 = arith.constant 0 : index
    %c0_23 = arith.constant 0 : index
    %c146 = arith.constant 146 : index
    %22 = vector.load %arg1[%c0_22, %c0_23, %c146] : memref<1x4x1872xf32, #tpu.memory_space<vmem>>, vector<1x4x1440xf32>
    %23 = vector.shape_cast %22 : vector<1x4x1440xf32> to vector<4x1440xf32>
    %c0_24 = arith.constant 0 : index
    %c0_25 = arith.constant 0 : index
    %c156 = arith.constant 156 : index
    %24 = vector.load %arg1[%c0_24, %c0_25, %c156] : memref<1x4x1872xf32, #tpu.memory_space<vmem>>, vector<1x4x1440xf32>
    %25 = vector.shape_cast %24 : vector<1x4x1440xf32> to vector<4x1440xf32>
    %c0_26 = arith.constant 0 : index
    %c0_27 = arith.constant 0 : index
    %c157 = arith.constant 157 : index
    %26 = vector.load %arg1[%c0_26, %c0_27, %c157] : memref<1x4x1872xf32, #tpu.memory_space<vmem>>, vector<1x4x1440xf32>
    %27 = vector.shape_cast %26 : vector<1x4x1440xf32> to vector<4x1440xf32>
    %c0_28 = arith.constant 0 : index
    %c0_29 = arith.constant 0 : index
    %c158 = arith.constant 158 : index
    %28 = vector.load %arg1[%c0_28, %c0_29, %c158] : memref<1x4x1872xf32, #tpu.memory_space<vmem>>, vector<1x4x1440xf32>
    %29 = vector.shape_cast %28 : vector<1x4x1440xf32> to vector<4x1440xf32>
    %c0_30 = arith.constant 0 : index
    %c0_31 = arith.constant 0 : index
    %c168 = arith.constant 168 : index
    %30 = vector.load %arg1[%c0_30, %c0_31, %c168] : memref<1x4x1872xf32, #tpu.memory_space<vmem>>, vector<1x4x1440xf32>
    %31 = vector.shape_cast %30 : vector<1x4x1440xf32> to vector<4x1440xf32>
    %c0_32 = arith.constant 0 : index
    %c0_33 = arith.constant 0 : index
    %c169 = arith.constant 169 : index
    %32 = vector.load %arg1[%c0_32, %c0_33, %c169] : memref<1x4x1872xf32, #tpu.memory_space<vmem>>, vector<1x4x1440xf32>
    %33 = vector.shape_cast %32 : vector<1x4x1440xf32> to vector<4x1440xf32>
    %c0_34 = arith.constant 0 : index
    %c0_35 = arith.constant 0 : index
    %c170 = arith.constant 170 : index
    %34 = vector.load %arg1[%c0_34, %c0_35, %c170] : memref<1x4x1872xf32, #tpu.memory_space<vmem>>, vector<1x4x1440xf32>
    %35 = vector.shape_cast %34 : vector<1x4x1440xf32> to vector<4x1440xf32>
    %c0_36 = arith.constant 0 : index
    %c0_37 = arith.constant 0 : index
    %c288 = arith.constant 288 : index
    %36 = vector.load %arg1[%c0_36, %c0_37, %c288] : memref<1x4x1872xf32, #tpu.memory_space<vmem>>, vector<1x4x1440xf32>
    %37 = vector.shape_cast %36 : vector<1x4x1440xf32> to vector<4x1440xf32>
    %c0_38 = arith.constant 0 : index
    %c0_39 = arith.constant 0 : index
    %c289 = arith.constant 289 : index
    %38 = vector.load %arg1[%c0_38, %c0_39, %c289] : memref<1x4x1872xf32, #tpu.memory_space<vmem>>, vector<1x4x1440xf32>
    %39 = vector.shape_cast %38 : vector<1x4x1440xf32> to vector<4x1440xf32>
    %c0_40 = arith.constant 0 : index
    %c0_41 = arith.constant 0 : index
    %c290 = arith.constant 290 : index
    %40 = vector.load %arg1[%c0_40, %c0_41, %c290] : memref<1x4x1872xf32, #tpu.memory_space<vmem>>, vector<1x4x1440xf32>
    %41 = vector.shape_cast %40 : vector<1x4x1440xf32> to vector<4x1440xf32>
    %c0_42 = arith.constant 0 : index
    %c0_43 = arith.constant 0 : index
    %c300 = arith.constant 300 : index
    %42 = vector.load %arg1[%c0_42, %c0_43, %c300] : memref<1x4x1872xf32, #tpu.memory_space<vmem>>, vector<1x4x1440xf32>
    %43 = vector.shape_cast %42 : vector<1x4x1440xf32> to vector<4x1440xf32>
    %c0_44 = arith.constant 0 : index
    %c0_45 = arith.constant 0 : index
    %c301 = arith.constant 301 : index
    %44 = vector.load %arg1[%c0_44, %c0_45, %c301] : memref<1x4x1872xf32, #tpu.memory_space<vmem>>, vector<1x4x1440xf32>
    %45 = vector.shape_cast %44 : vector<1x4x1440xf32> to vector<4x1440xf32>
    %c0_46 = arith.constant 0 : index
    %c0_47 = arith.constant 0 : index
    %c302 = arith.constant 302 : index
    %46 = vector.load %arg1[%c0_46, %c0_47, %c302] : memref<1x4x1872xf32, #tpu.memory_space<vmem>>, vector<1x4x1440xf32>
    %47 = vector.shape_cast %46 : vector<1x4x1440xf32> to vector<4x1440xf32>
    %c0_48 = arith.constant 0 : index
    %c0_49 = arith.constant 0 : index
    %c312 = arith.constant 312 : index
    %48 = vector.load %arg1[%c0_48, %c0_49, %c312] : memref<1x4x1872xf32, #tpu.memory_space<vmem>>, vector<1x4x1440xf32>
    %49 = vector.shape_cast %48 : vector<1x4x1440xf32> to vector<4x1440xf32>
    %c0_50 = arith.constant 0 : index
    %c0_51 = arith.constant 0 : index
    %c313 = arith.constant 313 : index
    %50 = vector.load %arg1[%c0_50, %c0_51, %c313] : memref<1x4x1872xf32, #tpu.memory_space<vmem>>, vector<1x4x1440xf32>
    %51 = vector.shape_cast %50 : vector<1x4x1440xf32> to vector<4x1440xf32>
    %c0_52 = arith.constant 0 : index
    %c0_53 = arith.constant 0 : index
    %c314 = arith.constant 314 : index
    %52 = vector.load %arg1[%c0_52, %c0_53, %c314] : memref<1x4x1872xf32, #tpu.memory_space<vmem>>, vector<1x4x1440xf32>
    %53 = vector.shape_cast %52 : vector<1x4x1440xf32> to vector<4x1440xf32>
    %54 = vector.shape_cast %1 : vector<4x1440xf32> to vector<1x4x1440xf32>
    %55 = vector.shape_cast %3 : vector<4x1440xf32> to vector<1x4x1440xf32>
    %56 = vector.shape_cast %5 : vector<4x1440xf32> to vector<1x4x1440xf32>
    %57 = vector.shape_cast %7 : vector<4x1440xf32> to vector<1x4x1440xf32>
    %58 = vector.shape_cast %9 : vector<4x1440xf32> to vector<1x4x1440xf32>
    %59 = vector.shape_cast %11 : vector<4x1440xf32> to vector<1x4x1440xf32>
    %60 = vector.shape_cast %13 : vector<4x1440xf32> to vector<1x4x1440xf32>
    %61 = vector.shape_cast %15 : vector<4x1440xf32> to vector<1x4x1440xf32>
    %62 = vector.shape_cast %17 : vector<4x1440xf32> to vector<1x4x1440xf32>
    %63 = vector.shape_cast %19 : vector<4x1440xf32> to vector<1x4x1440xf32>
    %64 = vector.shape_cast %21 : vector<4x1440xf32> to vector<1x4x1440xf32>
    %65 = vector.shape_cast %23 : vector<4x1440xf32> to vector<1x4x1440xf32>
    %66 = vector.shape_cast %25 : vector<4x1440xf32> to vector<1x4x1440xf32>
    %67 = vector.shape_cast %27 : vector<4x1440xf32> to vector<1x4x1440xf32>
    %68 = vector.shape_cast %29 : vector<4x1440xf32> to vector<1x4x1440xf32>
    %69 = vector.shape_cast %31 : vector<4x1440xf32> to vector<1x4x1440xf32>
    %70 = vector.shape_cast %33 : vector<4x1440xf32> to vector<1x4x1440xf32>
    %71 = vector.shape_cast %35 : vector<4x1440xf32> to vector<1x4x1440xf32>
    %72 = vector.shape_cast %37 : vector<4x1440xf32> to vector<1x4x1440xf32>
    %73 = vector.shape_cast %39 : vector<4x1440xf32> to vector<1x4x1440xf32>
    %74 = vector.shape_cast %41 : vector<4x1440xf32> to vector<1x4x1440xf32>
    %75 = vector.shape_cast %43 : vector<4x1440xf32> to vector<1x4x1440xf32>
    %76 = vector.shape_cast %45 : vector<4x1440xf32> to vector<1x4x1440xf32>
    %77 = vector.shape_cast %47 : vector<4x1440xf32> to vector<1x4x1440xf32>
    %78 = vector.shape_cast %49 : vector<4x1440xf32> to vector<1x4x1440xf32>
    %79 = vector.shape_cast %51 : vector<4x1440xf32> to vector<1x4x1440xf32>
    %80 = vector.shape_cast %53 : vector<4x1440xf32> to vector<1x4x1440xf32>
    %81 = tpu.concatenate %54, %55, %56, %57, %58, %59, %60, %61, %62, %63, %64, %65, %66, %67, %68, %69 in 0 : vector<1x4x1440xf32>, vector<1x4x1440xf32>, vector<1x4x1440xf32>, vector<1x4x1440xf32>, vector<1x4x1440xf32>, vector<1x4x1440xf32>, vector<1x4x1440xf32>, vector<1x4x1440xf32>, vector<1x4x1440xf32>, vector<1x4x1440xf32>, vector<1x4x1440xf32>, vector<1x4x1440xf32>, vector<1x4x1440xf32>, vector<1x4x1440xf32>, vector<1x4x1440xf32>, vector<1x4x1440xf32> -> vector<16x4x1440xf32>
    %82 = tpu.concatenate %70, %71, %72, %73, %74, %75, %76, %77, %78, %79, %80 in 0 : vector<1x4x1440xf32>, vector<1x4x1440xf32>, vector<1x4x1440xf32>, vector<1x4x1440xf32>, vector<1x4x1440xf32>, vector<1x4x1440xf32>, vector<1x4x1440xf32>, vector<1x4x1440xf32>, vector<1x4x1440xf32>, vector<1x4x1440xf32>, vector<1x4x1440xf32> -> vector<11x4x1440xf32>
    %83 = tpu.concatenate %81, %82 in 0 : vector<16x4x1440xf32>, vector<11x4x1440xf32> -> vector<27x4x1440xf32>
    %84 = vector.shape_cast %83 : vector<27x4x1440xf32> to vector<108x1440xf32>
    %c0_54 = arith.constant 0 : index
    %c0_55 = arith.constant 0 : index
    %85 = vector.load %arg2[%c0_54, %c0_55] : memref<8x108xf32, #tpu.memory_space<vmem>>, vector<8x108xf32>
    %cst = arith.constant dense<0.000000e+00> : vector<8x1440xf32>
    %86 = tpu.matmul %85, %84, %cst {dimension_numbers = #tpu.dot_dimension_numbers<[1], [0], [0], [1], [0, 0, 1, 1], [], []>} : vector<8x108xf32>, vector<108x1440xf32>, vector<8x1440xf32> -> vector<8x1440xf32>
    %c0_56 = arith.constant 0 : index
    %c0_57 = arith.constant 0 : index
    %87 = vector.load %arg3[%c0_56, %c0_57] : memref<8x1xf32, #tpu.memory_space<vmem>>, vector<8x1xf32>
    %88 = vector.broadcast %87 : vector<8x1xf32> to vector<8x1440xf32>
    %89 = arith.addf %86, %88 : vector<8x1440xf32>
    %c0_58 = arith.constant 0 : index
    %90 = memref.load %arg5[%c0_58] : memref<1xf32, #tpu.memory_space<smem>>
    %cst_59 = arith.constant 0.000000e+00 : f32
    %91 = vector.broadcast %cst_59 : f32 to vector<8x1440xf32>
    %92 = arith.cmpf oge, %89, %91 : vector<8x1440xf32>
    %93 = vector.broadcast %90 : f32 to vector<8x1440xf32>
    %94 = arith.mulf %93, %89 : vector<8x1440xf32>
    %95 = arith.select %92, %89, %94 : vector<8x1440xi1>, vector<8x1440xf32>
    %c0_60 = arith.constant 0 : index
    %c0_61 = arith.constant 0 : index
    %96 = vector.load %arg4[%c0_60, %c0_61] : memref<1x1440xf32, #tpu.memory_space<vmem>>, vector<1x1440xf32>
    %97 = vector.broadcast %96 : vector<1x1440xf32> to vector<8x1440xf32>
    %98 = arith.mulf %95, %97 : vector<8x1440xf32>
    %cst_62 = arith.constant dense<0.000000e+00> : vector<8xf32>
    %99 = vector.multi_reduction <add>, %98, %cst_62 [1] : vector<8x1440xf32> to vector<8xf32>
    %100 = vector.shape_cast %99 : vector<8xf32> to vector<8x1xf32>
    %101 = arith.mulf %98, %98 : vector<8x1440xf32>
    %cst_63 = arith.constant dense<0.000000e+00> : vector<8xf32>
    %102 = vector.multi_reduction <add>, %101, %cst_63 [1] : vector<8x1440xf32> to vector<8xf32>
    %103 = vector.shape_cast %102 : vector<8xf32> to vector<8x1xf32>
    %cst_64 = arith.constant 1.000000e-03 : f32
    %104 = vector.broadcast %cst_64 : f32 to vector<8x1xf32>
    %105 = arith.mulf %100, %104 : vector<8x1xf32>
    %cst_65 = arith.constant 1.000000e-03 : f32
    %106 = vector.broadcast %cst_65 : f32 to vector<8x1xf32>
    %107 = arith.mulf %103, %106 : vector<8x1xf32>
    %108 = arith.mulf %105, %105 : vector<8x1xf32>
    %109 = arith.subf %107, %108 : vector<8x1xf32>
    %cst_66 = arith.constant 0.000000e+00 : f32
    %110 = vector.broadcast %cst_66 : f32 to vector<8x1xf32>
    %111 = arith.maximumf %109, %110 : vector<8x1xf32>
    %112 = vector.broadcast %105 : vector<8x1xf32> to vector<8x1440xf32>
    %113 = arith.subf %95, %112 : vector<8x1440xf32>
    %cst_67 = arith.constant 9.99999974E-6 : f32
    %114 = vector.broadcast %cst_67 : f32 to vector<8x1xf32>
    %115 = arith.addf %111, %114 : vector<8x1xf32>
    %116 = math.rsqrt %115 : vector<8x1xf32>
    %117 = vector.broadcast %116 : vector<8x1xf32> to vector<8x1440xf32>
    %118 = arith.mulf %113, %117 : vector<8x1440xf32>
    %c0_68 = arith.constant 0 : index
    %c0_69 = arith.constant 0 : index
    %c0_70 = arith.constant 0 : index
    %119 = vector.load %arg6[%c0_68, %c0_69, %c0_70] : memref<1x8x1440xf32, #tpu.memory_space<vmem>>, vector<1x8x1440xf32>
    %120 = vector.shape_cast %119 : vector<1x8x1440xf32> to vector<8x1440xf32>
    %121 = vector.shape_cast %118 : vector<8x1440xf32> to vector<1x8x1440xf32>
    tpu.vector_store %arg6[%c0_68, %c0_69, %c0_70], %121 {strides = array<i32>} : memref<1x8x1440xf32, #tpu.memory_space<vmem>>, vector<1x8x1440xf32>,
    return
  }
  func.func @transform_0(%arg0: i32) -> (i32, i32, i32) {
    %c0_i32 = arith.constant 0 : i32
    %c0_i32_0 = arith.constant 0 : i32
    %c0_i32_1 = arith.constant 0 : i32
    return %arg0, %c0_i32, %c0_i32_0 : i32, i32, i32
  }
  func.func @transform_1(%arg0: i32) -> (i32, i32) {
    %c0_i32 = arith.constant 0 : i32
    %c0_i32_0 = arith.constant 0 : i32
    %c0_i32_1 = arith.constant 0 : i32
    return %c0_i32, %c0_i32_0 : i32, i32
  }
  func.func @transform_2(%arg0: i32) -> (i32, i32) {
    %c0_i32 = arith.constant 0 : i32
    %c0_i32_0 = arith.constant 0 : i32
    %c0_i32_1 = arith.constant 0 : i32
    return %c0_i32, %c0_i32_0 : i32, i32
  }
  func.func @transform_3(%arg0: i32) -> (i32, i32) {
    %c0_i32 = arith.constant 0 : i32
    %c0_i32_0 = arith.constant 0 : i32
    %c0_i32_1 = arith.constant 0 : i32
    return %c0_i32, %c0_i32_0 : i32, i32
  }
  func.func @transform_4(%arg0: i32) -> i32 {
    %c0_i32 = arith.constant 0 : i32
    %c0_i32_0 = arith.constant 0 : i32
    return %c0_i32 : i32
  }
  func.func @transform_5(%arg0: i32) -> (i32, i32, i32) {
    %c0_i32 = arith.constant 0 : i32
    %c0_i32_0 = arith.constant 0 : i32
    %c0_i32_1 = arith.constant 0 : i32
    return %arg0, %c0_i32, %c0_i32_0 : i32, i32, i32
  }
}

</mosaic_0001>

<bundles_post_ra>
// kernel: single_conv_block_transposed.1
= control target key start
LH: loop header
LB: loop body
LE: loop exit
PB: predicated region body
PF: predicated region fallthrough
CT: control target
= control target key end

     0   :  { %s2674_s20 = smov 0   ;;  %s4546_s0 = inlined_call_operand.vmem [shape: f32[2,4,1872], index: 0, kind: input, shape index: {}]   ;;  %s4547_s1 = inlined_call_operand.vmem [shape: f32[8,108], index: 1, kind: input, shape index: {}]   ;;  %s4548_s2 = inlined_call_operand.vmem [shape: f32[8,1], index: 2, kind: input, shape index: {}]   ;;  %s4549_s3 = inlined_call_operand.vmem [shape: f32[1,1440], index: 3, kind: input, shape index: {}]   ;;  %s4550_s4 = inlined_call_operand.<no memory space> [shape: f32[1], index: 4, kind: input, shape index: {}]   ;;  %s4551_s5 = inlined_call_operand.vmem [shape: f32[2,8,1440], index: 5, kind: output, shape index: {}]  }
   0x1   :  { %10 = sst [smem:[#allocation2]] %s4550_s4 }
   0x2 LB: > { %s2352_s21 = sadd.s32 4294967295, %s2613_s20   ;;  %p2356_p0 = scmp.ge.s32.totalorder %s2613_s20, 1  ;;  %s2613_s20 = sphi %s2674_s20, %s16_s20  }
   0x3   : > { %p188_p1 = scmp.lt.s32.totalorder %s2613_s20, 3 }
   0x5   : > { %p189_p2 = pnand %p2356_p0, %p188_p1 }
   0x7   : > { %192 = sbr.rel (%p189_p2) target bundleno = 978 (0x3d2), region = 40 }
   0xe   : > { %p216_p3 = scmp.lt.s32.totalorder %s2352_s21, 1  ;;  %s2615_s25 = smov 127   ;;  %vm263_vm0 = vcmask 1043456   ;;  %vm871_vm1 = vcmask 1014784   ;;  %vm265_vm2 = vcmask 1039360   ;;  %vm901_vm3 = vcmask 1006592  }
   0xf   : > { %s2616_s26 = smov 9   ;;  %s2617_s27 = smov 8   ;;  %vm750_vm4 = vcmask 72704   ;;  %vm780_vm5 = vcmask 64512   ;;  %vm931_vm6 = vcmask 924672   ;;  %vm810_vm7 = vcmask 56320  }
  0x10   : > { %s4851_s21 = smov (!%p216_p3, %s2352_s21), 1  ;;  %s2618_s28 = smov 7   ;;  %vm841_vm8 = vcmask 1022976   ;;  %vm4635_vm9 = vcmask 1031168   ;;  %vm4575_vm10 = vcmask 949248   ;;  %vm511_vm11 = vcmask 916480  }
  0x11   : > { %s2559_s4 = smul.u32 60, %s4851_s21  ;;  %s2619_s29 = smov 125   ;;  %vm541_vm12 = vcmask 908288   ;;  %vm4580_vm13 = vcmask 932864   ;;  %vm4581_vm14 = vcmask 941056   ;;  %vm4577_vm15 = vcmask 850944  }
  0x12   : > { %s2620_s30 = smov 124   ;;  %s2621_s6 = smov 123  }
  0x13   : > { %s2688_s24 = scalar_lea.vmem %s4546_s0, %s2559_s4  ;;  %s2622_s7 = smov 113  }
  0x14   : > { %v2691_v0 = vld [vmem:[%s2688_s24 + $0x14] sm:$0xff]  ;;  %v2694_v1 = vld [vmem:[%s2688_s24 + $0x4] sm:$0xff]  ;;  %v2701_v2 = vld [vmem:[%s2688_s24 + $0xc] sm:$0xff]  ;;  %s2623_s8 = smov 112   ;;  %s2624_s9 = smov 111  }
  0x15   : > { %706 = vrot.lane.b32.xlu1 %v2691_v0, %s2615_s25  ;;  %702 = vrot.lane.b32.xlu0 %v2694_v1, %s2615_s25  ;;  %v2704_v3 = vld [vmem:[%s2688_s24 + $0x8] sm:$0xff]  ;;  %v2711_v4 = vld [vmem:[%s2688_s24 + $0x10] sm:$0xff]  ;;  %s2625_s10 = smov 126   ;;  %s2626_s11 = smov 116  }
  0x16   : > { %v235_v5 = vld [vmem:[%s2688_s24 + $0x1c] sm:$0xff]  ;;  %v2784_v8 = vld [vmem:[%s2688_s24 + $0x24] sm:$0xff]  ;;  %v237_v9 = vld [vmem:[%s2688_s24 + $0x2c] sm:$0xff]  ;;  %s2627_s12 = smov 115   ;;  %s2628_s13 = smov 114  }
  0x17   : > { %v2722_v6 = vld [vmem:[%s2688_s24 + $0x18] sm:$0xff]  ;;  %v2753_v7 = vld [vmem:[%s2688_s24 + $0x20] sm:$0xff]  ;;  %v231_v10 = vld [vmem:[%s2688_s24 + $0x28] sm:$0xff]  ;;  %s2629_s14 = smov 104   ;;  %s2630_s15 = smov 103  }
  0x18   : > { %v2806_v11 = vld [vmem:[%s2688_s24 + $0x30] sm:$0xff]  ;;  %v2822_v12 = vld [vmem:[%s2688_s24] sm:$0xff]  ;;  %s2631_s16 = smov 102   ;;  %s2632_s17 = smov 110  }
  0x19   : > { %704 = vrot.lane.b32.xlu0 %v2701_v2, %s2615_s25  ;;  %732 = vrot.lane.b32.xlu1 %v2704_v3, %s2616_s26  ;;  %s2633_s18 = smov 100   ;;  %s2634_s19 = smov 99  }
  0x1a   : > { %s2635_s4 = smov 98   ;;  %s2636_s22 = smov 88  }
  0x1b   : > { %s2637_s23 = smov 87  }
  0x1d   : > { %734 = vrot.lane.b32.xlu0 %v2711_v4, %s2616_s26  ;;  %762 = vrot.lane.b32.xlu1 %v2704_v3, %s2617_s27 }
  0x21   : > { %764 = vrot.lane.b32.xlu0 %v2711_v4, %s2617_s27  ;;  %708 = vrot.lane.b32.xlu1 %v235_v5, %s2615_s25 }
  0x25   : > { %736 = vrot.lane.b32.xlu0 %v2722_v6, %s2616_s26  ;;  %766 = vrot.lane.b32.xlu1 %v2722_v6, %s2617_s27 }
  0x29   : > { %792 = vrot.lane.b32.xlu0 %v2704_v3, %s2618_s28  ;;  %794 = vrot.lane.b32.xlu1 %v2711_v4, %s2618_s28 }
  0x2d   : > { %822 = vrot.lane.b32.xlu0 %v2704_v3, %s2619_s29  ;;  %824 = vrot.lane.b32.xlu1 %v2711_v4, %s2619_s29 }
  0x31   : > { %826 = vrot.lane.b32.xlu0 %v2722_v6, %s2619_s29  ;;  %852 = vrot.lane.b32.xlu1 %v2704_v3, %s2620_s30 }
  0x35   : > { %854 = vrot.lane.b32.xlu0 %v2711_v4, %s2620_s30  ;;  %856 = vrot.lane.b32.xlu1 %v2722_v6, %s2620_s30 }
  0x39   : > { %882 = vrot.lane.b32.xlu0 %v2704_v3, %s2621_s6  ;;  %884 = vrot.lane.b32.xlu1 %v2711_v4, %s2621_s6 }
  0x3d   : > { %886 = vrot.lane.b32.xlu0 %v2722_v6, %s2621_s6  ;;  %796 = vrot.lane.b32.xlu1 %v2722_v6, %s2618_s28 }
  0x41   : > { %828 = vrot.lane.b32.xlu0 %v2753_v7, %s2619_s29  ;;  %858 = vrot.lane.b32.xlu1 %v2753_v7, %s2620_s30 }
  0x45   : > { %888 = vrot.lane.b32.xlu0 %v2753_v7, %s2621_s6  ;;  %912 = vrot.lane.b32.xlu1 %v2704_v3, %s2622_s7 }
  0x49   : > { %914 = vrot.lane.b32.xlu0 %v2711_v4, %s2622_s7  ;;  %916 = vrot.lane.b32.xlu1 %v2722_v6, %s2622_s7 }
  0x4d   : > { %942 = vrot.lane.b32.xlu0 %v2704_v3, %s2623_s8  ;;  %944 = vrot.lane.b32.xlu1 %v2711_v4, %s2623_s8 }
  0x51   : > { %946 = vrot.lane.b32.xlu0 %v2722_v6, %s2623_s8  ;;  %971 = vrot.lane.b32.xlu1 %v2704_v3, %s2624_s9 }
  0x55   : > { %973 = vrot.lane.b32.xlu0 %v2711_v4, %s2624_s9  ;;  %975 = vrot.lane.b32.xlu1 %v2722_v6, %s2624_s9 }
  0x59   : > { %918 = vrot.lane.b32.xlu0 %v2753_v7, %s2622_s7  ;;  %948 = vrot.lane.b32.xlu1 %v2753_v7, %s2623_s8 }
  0x5d   : > { %977 = vrot.lane.b32.xlu0 %v2753_v7, %s2624_s9  ;;  %710 = vrot.lane.b32.xlu1 %v2784_v8, %s2615_s25 }
  0x61   : > { %738 = vrot.lane.b32.xlu0 %v2753_v7, %s2616_s26  ;;  %768 = vrot.lane.b32.xlu1 %v2753_v7, %s2617_s27 }
  0x65   : > { %712 = vrot.lane.b32.xlu0 %v237_v9, %s2615_s25  ;;  %740 = vrot.lane.b32.xlu1 %v231_v10, %s2616_s26 }
  0x69   : > { %770 = vrot.lane.b32.xlu0 %v231_v10, %s2617_s27  ;;  %798 = vrot.lane.b32.xlu1 %v2753_v7, %s2618_s28 }
  0x6d   : > { %830 = vrot.lane.b32.xlu0 %v231_v10, %s2619_s29  ;;  %860 = vrot.lane.b32.xlu1 %v231_v10, %s2620_s30 }
  0x71   : > { %890 = vrot.lane.b32.xlu0 %v231_v10, %s2621_s6  ;;  %800 = vrot.lane.b32.xlu1 %v231_v10, %s2618_s28 }
  0x75   : > { %832 = vrot.lane.b32.xlu0 %v2806_v11, %s2619_s29  ;;  %862 = vrot.lane.b32.xlu1 %v2806_v11, %s2620_s30  ;;  %s2099_s30 = sld [smem:[#allocation2]] }
  0x79   : > { %892 = vrot.lane.b32.xlu0 %v2806_v11, %s2621_s6  ;;  %920 = vrot.lane.b32.xlu1 %v231_v10, %s2622_s7 }
  0x7d   : > { %950 = vrot.lane.b32.xlu0 %v231_v10, %s2623_s8  ;;  %979 = vrot.lane.b32.xlu1 %v231_v10, %s2624_s9 }
  0x81   : > { %922 = vrot.lane.b32.xlu0 %v2806_v11, %s2622_s7  ;;  %952 = vrot.lane.b32.xlu1 %v2806_v11, %s2623_s8 }
  0x85   : > { %981 = vrot.lane.b32.xlu0 %v2806_v11, %s2624_s9  ;;  %245 = vrot.lane.b32.xlu1 %v2822_v12, %s2615_s25 }
  0x87   : > { %v2828_v13 = vpop.permute.xlu1 %706  ;;  %v2830_v14 = vpop.permute.xlu0 %702 }
  0x88   : > { %v714_v63 = vrot.slane %v2830_v14, 4 }
  0x89   : > { %247 = vrot.lane.b32.xlu0 %v2704_v3, %s2615_s25  ;;  %276 = vrot.lane.b32.xlu1 %v2822_v12, %s2625_s10 }
  0x8b   : > { %v2836_v15 = vpop.permute.xlu0 %704  ;;  %v2838_v16 = vpop.permute.xlu1 %732 }
  0x8c   : > { %v715_v61 = vrot.slane %v2836_v15, 4 }
  0x8d   : > { %278 = vrot.lane.b32.xlu0 %v2704_v3, %s2625_s10  ;;  %306 = vrot.lane.b32.xlu1 %v2822_v12, %s2626_s11 }
  0x8f   : > { %v2844_v17 = vpop.permute.xlu0 %734  ;;  %v2846_v18 = vpop.permute.xlu1 %762 }
  0x91   : > { %308 = vrot.lane.b32.xlu0 %v2704_v3, %s2626_s11  ;;  %249 = vrot.lane.b32.xlu1 %v2711_v4, %s2615_s25 }
  0x93   : > { %v2852_v19 = vpop.permute.xlu0 %764  ;;  %v2854_v20 = vpop.permute.xlu1 %708 }
  0x95   : > { %280 = vrot.lane.b32.xlu0 %v2711_v4, %s2625_s10  ;;  %310 = vrot.lane.b32.xlu1 %v2711_v4, %s2626_s11 }
  0x97   : > { %v2860_v21 = vpop.permute.xlu0 %736  ;;  %v2862_v22 = vpop.permute.xlu1 %766 }
  0x99   : > { %336 = vrot.lane.b32.xlu0 %v2822_v12, %s2627_s12  ;;  %338 = vrot.lane.b32.xlu1 %v2704_v3, %s2627_s12 }
  0x9b   : > { %v2868_v23 = vpop.permute.xlu0 %792  ;;  %v2870_v24 = vpop.permute.xlu1 %794 }
  0x9d   : > { %366 = vrot.lane.b32.xlu0 %v2822_v12, %s2628_s13  ;;  %368 = vrot.lane.b32.xlu1 %v2704_v3, %s2628_s13 }
  0x9f   : > { %v2876_v25 = vpop.permute.xlu0 %822  ;;  %v2878_v26 = vpop.permute.xlu1 %824 }
  0xa1   : > { %396 = vrot.lane.b32.xlu0 %v2822_v12, %s2629_s14  ;;  %398 = vrot.lane.b32.xlu1 %v2704_v3, %s2629_s14 }
  0xa3   : > { %v2884_v27 = vpop.permute.xlu0 %826  ;;  %v2886_v28 = vpop.permute.xlu1 %852 }
  0xa5   : > { %426 = vrot.lane.b32.xlu0 %v2822_v12, %s2630_s15  ;;  %428 = vrot.lane.b32.xlu1 %v2704_v3, %s2630_s15 }
  0xa7   : > { %v2892_v29 = vpop.permute.xlu0 %854  ;;  %v2894_v30 = vpop.permute.xlu1 %856 }
  0xa9   : > { %340 = vrot.lane.b32.xlu0 %v2711_v4, %s2627_s12  ;;  %370 = vrot.lane.b32.xlu1 %v2711_v4, %s2628_s13 }
  0xab   : > { %v2900_v31 = vpop.permute.xlu0 %882  ;;  %v2902_v32 = vpop.permute.xlu1 %884 }
  0xad   : > { %400 = vrot.lane.b32.xlu0 %v2711_v4, %s2629_s14  ;;  %430 = vrot.lane.b32.xlu1 %v2711_v4, %s2630_s15 }
  0xaf   : > { %v2908_v33 = vpop.permute.xlu0 %886  ;;  %v2910_v34 = vpop.permute.xlu1 %796 }
  0xb1   : > { %456 = vrot.lane.b32.xlu0 %v2822_v12, %s2631_s16  ;;  %458 = vrot.lane.b32.xlu1 %v2704_v3, %s2631_s16 }
  0xb3   : > { %v2916_v35 = vpop.permute.xlu0 %828  ;;  %v2918_v36 = vpop.permute.xlu1 %858 }
  0xb4   : > { %v4553_v59 = vrot.slane %v2918_v36, 4 }
  0xb5   : > { %492 = vrot.lane.b32.xlu0 %v2694_v1, %s2623_s8  ;;  %494 = vrot.lane.b32.xlu1 %v2701_v2, %s2623_s8 }
  0xb7   : > { %v2924_v37 = vpop.permute.xlu0 %888  ;;  %v2926_v38 = vpop.permute.xlu1 %912 }
  0xb8   : > { %v4560_v10 = vrot.slane %v2924_v37, 4 }
  0xb9   : > { %522 = vrot.lane.b32.xlu0 %v2694_v1, %s2624_s9  ;;  %524 = vrot.lane.b32.xlu1 %v2701_v2, %s2624_s9 }
  0xbb   : > { %v2932_v39 = vpop.permute.xlu0 %914  ;;  %v2934_v40 = vpop.permute.xlu1 %916 }
  0xbd   : > { %552 = vrot.lane.b32.xlu0 %v2694_v1, %s2632_s17  ;;  %554 = vrot.lane.b32.xlu1 %v2701_v2, %s2632_s17 }
  0xbf   : > { %v2940_v41 = vpop.permute.xlu0 %942  ;;  %v2942_v42 = vpop.permute.xlu1 %944 }
  0xc1   : > { %742 = vrot.lane.b32.xlu0 %v2806_v11, %s2616_s26  ;;  %772 = vrot.lane.b32.xlu1 %v2806_v11, %s2617_s27 }
  0xc3   : > { %v2948_v43 = vpop.permute.xlu0 %946  ;;  %v2950_v44 = vpop.permute.xlu1 %971 }
  0xc5   : > { %460 = vrot.lane.b32.xlu0 %v2711_v4, %s2631_s16  ;;  %496 = vrot.lane.b32.xlu1 %v2691_v0, %s2623_s8 }
  0xc7   : > { %v2956_v45 = vpop.permute.xlu0 %973  ;;  %v2958_v46 = vpop.permute.xlu1 %975 }
  0xc9   : > { %526 = vrot.lane.b32.xlu0 %v2691_v0, %s2624_s9  ;;  %556 = vrot.lane.b32.xlu1 %v2691_v0, %s2632_s17 }
  0xcb   : > { %v2964_v47 = vpop.permute.xlu0 %918  ;;  %v2966_v48 = vpop.permute.xlu1 %948 }
  0xcd   : > { %582 = vrot.lane.b32.xlu0 %v2694_v1, %s2633_s18  ;;  %584 = vrot.lane.b32.xlu1 %v2701_v2, %s2633_s18 }
  0xcf   : > { %v2972_v49 = vpop.permute.xlu0 %977  ;;  %v2974_v50 = vpop.permute.xlu1 %710 }
  0xd1   : > { %612 = vrot.lane.b32.xlu0 %v2694_v1, %s2634_s19  ;;  %614 = vrot.lane.b32.xlu1 %v2701_v2, %s2634_s19 }
  0xd3   : > { %v2980_v51 = vpop.permute.xlu0 %738  ;;  %v2982_v52 = vpop.permute.xlu1 %768 }
  0xd5   : > { %642 = vrot.lane.b32.xlu0 %v2694_v1, %s2635_s4  ;;  %644 = vrot.lane.b32.xlu1 %v2701_v2, %s2635_s4 }
  0xd7   : > { %v2988_v53 = vpop.permute.xlu0 %712  ;;  %v2990_v54 = vpop.permute.xlu1 %740 }
  0xd9   : > { %672 = vrot.lane.b32.xlu0 %v2694_v1, %s2636_s22  ;;  %674 = vrot.lane.b32.xlu1 %v2701_v2, %s2636_s22 }
  0xdb   : > { %v2996_v55 = vpop.permute.xlu0 %770  ;;  %v2998_v56 = vpop.permute.xlu1 %798 }
  0xdd   : > { %802 = vrot.lane.b32.xlu0 %v2806_v11, %s2618_s28  ;;  %586 = vrot.lane.b32.xlu1 %v2691_v0, %s2633_s18 }
  0xdf   : > { %v3004_v57 = vpop.permute.xlu0 %830  ;;  %v3006_v58 = vpop.permute.xlu1 %860 }
  0xe0   : > { %4651 = vst [vmem:[#allocation3_spill] sm:$0xff] %v3004_v57  ;;  %4652 = vst [vmem:[#allocation4_spill] sm:$0xff] %v3006_v58  ;;  %v4552_v60 = vrot.slane %v3006_v58, 4  ;;  %v744_v58 = vrot.slane %v2838_v16, 4  ;;  %v4670_v57 = vrot.slane %v2894_v30, 4 }
  0xe1   : > { %616 = vrot.lane.b32.xlu0 %v2691_v0, %s2634_s19  ;;  %646 = vrot.lane.b32.xlu1 %v2691_v0, %s2635_s4 }
  0xe2   : > { %v877_v62 = vsel %vm263_vm0, %v4553_v59, %v4552_v60  ;;  %v720_v60 = vsel %vm263_vm0, %v714_v63, %v715_v61  ;;  %v716_v59 = vrot.slane %v2828_v13, 4 }
  0xe3   : > { %v3021_v4 = vpop.permute.xlu0 %890  ;;  %v3023_v5 = vpop.permute.xlu1 %800  ;;  %v3027_v9 = vsel %vm871_vm1, %v2918_v36, %v877_v62  ;;  %v721_v63 = vsel %vm265_vm2, %v2830_v14, %v720_v60  ;;  %v4565_v14 = vrot.slane %v2964_v47, 4 }
  0xe4   : > { %4653 = vst [vmem:[#allocation5_spill] sm:$0xff] %v3021_v4  ;;  %4654 = vst [vmem:[#allocation6_spill] sm:$0xff] %v3023_v5  ;;  %v4559_v11 = vrot.slane %v3021_v4, 4  ;;  %v745_v4 = vrot.slane %v2844_v17, 4 }
  0xe5   : > { %4655 = vst [vmem:[#allocation7_spill] sm:$0xff] %v3027_v9  ;;  %676 = vrot.lane.b32.xlu0 %v2691_v0, %s2636_s22  ;;  %1000 = vrot.lane.b32.xlu1 %v2694_v1, %s2637_s23 }
  0xe6   : > { %v907_v62 = vsel %vm263_vm0, %v4560_v10, %v4559_v11  ;;  %v722_v11 = vsel %vm263_vm0, %v715_v61, %v716_v59  ;;  %v752_v61 = vsel %vm263_vm0, %v744_v58, %v745_v4 }
  0xe7   : > { %v3043_v9 = vpop.permute.xlu0 %832  ;;  %v3045_v5 = vpop.permute.xlu1 %862  ;;  %v3049_v1 = vsel %vm901_vm3, %v2924_v37, %v907_v62  ;;  %v751_v62 = vsel %vm750_vm4, %v744_v58, %v2838_v16  ;;  %v753_v58 = vsel %vm750_vm4, %v752_v61, %v2844_v17  ;;  %v4666_v61 = vrot.slane %v2854_v20, 4 }
  0xe8   : > { %4656 = vst [vmem:[#allocation8_spill] sm:$0xff] %v3043_v9  ;;  %4657 = vst [vmem:[#allocation9_spill] sm:$0xff] %v3045_v5 }
  0xe9   : > { %4658 = vst [vmem:[#allocation10_spill] sm:$0xff] %v3049_v1  ;;  %1002 = vrot.lane.b32.xlu0 %v2701_v2, %s2637_s23  ;;  %1012 = vrot.lane.b32.xlu1 %v721_v63, %s2637_s23  ;;  %v774_v1 = vrot.slane %v2846_v18, 4  ;;  %v723_v2 = vsel %vm265_vm2, %v2836_v15, %v722_v11  ;;  %v775_v63 = vrot.slane %v2852_v19, 4 }
  0xeb   : > { %v3058_v10 = vpop.permute.xlu0 %892  ;;  %v3060_v5 = vpop.permute.xlu1 %920 }
  0xec   : > { %4659 = vst [vmem:[#allocation11_spill] sm:$0xff] %v3058_v10  ;;  %4660 = vst [vmem:[#allocation12_spill] sm:$0xff] %v3060_v5  ;;  %v4564_v60 = vrot.slane %v3060_v5, 4 }
  0xed   : > { %1014 = vrot.lane.b32.xlu0 %v723_v2, %s2637_s23  ;;  %1024 = vrot.lane.b32.xlu1 %v751_v62, %s2637_s23  ;;  %v781_v62 = vsel %vm780_vm5, %v774_v1, %v2846_v18  ;;  %v4566_v2 = vrot.slane %v2860_v21, 4  ;;  %v724_v18 = vsel %vm263_vm0, %v716_v59, %v4666_v61  ;;  %v834_v59 = vrot.slane %v2876_v25, 4 }
  0xee   : > { %v937_v16 = vsel %vm263_vm0, %v4565_v14, %v4564_v60  ;;  %v782_v60 = vsel %vm263_vm0, %v774_v1, %v775_v63 }
  0xef   : > { %v3078_v10 = vpop.permute.xlu0 %950  ;;  %v3080_v9 = vpop.permute.xlu1 %979  ;;  %v3084_v15 = vsel %vm931_vm6, %v2964_v47, %v937_v16  ;;  %v783_v17 = vsel %vm780_vm5, %v782_v60, %v2852_v19  ;;  %v754_v1 = vsel %vm263_vm0, %v745_v4, %v4566_v2  ;;  %v725_v60 = vsel %vm265_vm2, %v2828_v13, %v724_v18 }
  0xf0   : > { %4661 = vst [vmem:[#allocation13_spill] sm:$0xff] %v3078_v10  ;;  %4662 = vst [vmem:[#allocation14_spill] sm:$0xff] %v3080_v9  ;;  %v4668_v4 = vrot.slane %v2862_v22, 4 }
  0xf1   : > { %4663 = vst [vmem:[#allocation15_spill] sm:$0xff] %v3084_v15  ;;  %1026 = vrot.lane.b32.xlu0 %v753_v58, %s2637_s23  ;;  %1036 = vrot.lane.b32.xlu1 %v781_v62, %s2637_s23  ;;  %v804_v58 = vrot.slane %v2868_v23, 4  ;;  %v805_v62 = vrot.slane %v2870_v24, 4 }
  0xf2   : > { %v784_v61 = vsel %vm263_vm0, %v775_v63, %v4668_v4  ;;  %v865_v63 = vrot.slane %v2892_v29, 4 }
  0xf3   : > { %v3095_v14 = vpop.permute.xlu0 %922  ;;  %v3097_v16 = vpop.permute.xlu1 %952  ;;  %v785_v13 = vsel %vm780_vm5, %v784_v61, %v2862_v22  ;;  %v811_v18 = vsel %vm810_vm7, %v804_v58, %v2868_v23  ;;  %v812_v5 = vsel %vm263_vm0, %v804_v58, %v805_v62  ;;  %v864_v61 = vrot.slane %v2886_v28, 4 }
  0xf4   : > { %4664 = vst [vmem:[#allocation16_spill] sm:$0xff] %v3095_v14  ;;  %4665 = vst [vmem:[#allocation17_spill] sm:$0xff] %v3097_v16  ;;  %v894_v23 = vrot.slane %v2900_v31, 4  ;;  %v895_v58 = vrot.slane %v2902_v32, 4  ;;  %v813_v15 = vsel %vm810_vm7, %v812_v5, %v2870_v24  ;;  %v873_v24 = vsel %vm263_vm0, %v865_v63, %v4670_v57 }
  0xf5   : > { %1038 = vrot.lane.b32.xlu0 %v783_v17, %s2637_s23  ;;  %1004 = vrot.lane.b32.xlu1 %v2691_v0, %s2637_s23  ;;  %v835_v17 = vrot.slane %v2878_v26, 4  ;;  %v755_v0 = vsel %vm750_vm4, %v754_v1, %v2860_v21  ;;  %v870_v9 = vsel %vm263_vm0, %v864_v61, %v865_v63 }
  0xf7   : > { %v3113_v11 = vpop.permute.xlu0 %981  ;;  %v246_v19 = vpop.permute.xlu1 %245 }
  0xf8   : > { %4667 = vst [vmem:[#allocation18_spill] sm:$0xff] %v3113_v11  ;;  %v257_v16 = vrot.slane %v246_v19, 4 }
  0xf9   : > { %1016 = vrot.lane.b32.xlu0 %v725_v60, %s2637_s23  ;;  %1028 = vrot.lane.b32.xlu1 %v755_v0, %s2637_s23  ;;  %v840_v0 = vsel %vm263_vm0, %v834_v59, %v835_v17 }
  0xfa   : > { %v842_v59 = vsel %vm841_vm8, %v2876_v25, %v840_v0 }
  0xfb   : > { %v3126_v2 = vpop.permute.xlu0 %247  ;;  %v277_v11 = vpop.permute.xlu1 %276 }
  0xfc   : > { %v258_v60 = vrot.slane %v3126_v2, 4  ;;  %v288_v0 = vrot.slane %v277_v11, 4 }
  0xfd   : > { %1040 = vrot.lane.b32.xlu0 %v785_v13, %s2637_s23  ;;  %1048 = vrot.lane.b32.xlu1 %v811_v18, %s2637_s23  ;;  %v4669_v13 = vrot.slane %v2884_v27, 4 }
  0xfe   : > { %v264_v10 = vsel %vm263_vm0, %v257_v16, %v258_v60  ;;  %v872_v16 = vsel %vm871_vm1, %v2886_v28, %v870_v9  ;;  %v4671_v9 = vrot.slane %v2908_v33, 4 }
  0xff   : > { %v279_v1 = vpop.permute.xlu0 %278  ;;  %v307_v14 = vpop.permute.xlu1 %306  ;;  %v843_v18 = vsel %vm263_vm0, %v835_v17, %v4669_v13  ;;  %v900_v17 = vsel %vm263_vm0, %v894_v23, %v895_v58  ;;  %v874_v23 = vsel %vm871_vm1, %v2892_v29, %v873_v24 }
 0x100   : > { %v289_v4 = vrot.slane %v279_v1, 4  ;;  %v318_v57 = vrot.slane %v307_v14, 4 }
 0x101   : > { %1050 = vrot.lane.b32.xlu0 %v813_v15, %s2637_s23  ;;  %1060 = vrot.lane.b32.xlu1 %v842_v59, %s2637_s23  ;;  %v844_v15 = vsel %vm841_vm8, %v2878_v26, %v843_v18  ;;  %v266_v59 = vsel %vm265_vm2, %v246_v19, %v264_v10  ;;  %v902_v26 = vsel %vm901_vm3, %v2900_v31, %v900_v17  ;;  %v4672_v19 = vrot.slane %v2910_v34, 4 }
 0x102   : > { %v294_v5 = vsel %vm263_vm0, %v288_v0, %v289_v4  ;;  %v903_v10 = vsel %vm263_vm0, %v895_v58, %v4671_v9  ;;  %v1328_v17 = vcombine.high %v2822_v12, %v266_v59  ;;  %v1327_v58 = vcombine.low %v2822_v12, %v266_v59 }
 0x103   : > { %v309_v13 = vpop.permute.xlu0 %308  ;;  %v3160_v61 = vpop.permute.xlu1 %249  ;;  %v814_v18 = vsel %vm263_vm0, %v805_v62, %v4672_v19  ;;  %v296_v31 = vsel %vm4635_vm9, %v277_v11, %v294_v5 }
 0x104   : > { %v319_v63 = vrot.slane %v309_v13, 4  ;;  %v4599_v25 = vrot.slane %v3160_v61, 4 }
 0x105   : > { %1062 = vrot.lane.b32.xlu0 %v844_v15, %s2637_s23  ;;  %1072 = vrot.lane.b32.xlu1 %v872_v16, %s2637_s23 }
 0x106   : > { %v324_v28 = vsel %vm263_vm0, %v318_v57, %v319_v63  ;;  %v267_v0 = vsel %vm263_vm0, %v258_v60, %v4599_v25  ;;  %v837_v60 = vrot.slane %v2916_v35, 4  ;;  %v4611_v25 = vrot.slane %v2996_v55, 4 }
 0x107   : > { %v3185_v15 = vpop.permute.xlu0 %280  ;;  %v3187_v29 = vpop.permute.xlu1 %310  ;;  %v326_v24 = vsel %vm4575_vm10, %v307_v14, %v324_v28  ;;  %v268_v11 = vsel %vm265_vm2, %v3126_v2, %v267_v0  ;;  %v815_v2 = vsel %vm810_vm7, %v814_v18, %v2910_v34 }
 0x108   : > { %v4598_v16 = vrot.slane %v3185_v15, 4  ;;  %v4597_v62 = vrot.slane %v3187_v29, 4  ;;  %v1340_v57 = vcombine.high %v296_v31, %v326_v24  ;;  %v1339_v9 = vcombine.low %v296_v31, %v326_v24 }
 0x109   : > { %1074 = vrot.lane.b32.xlu0 %v874_v23, %s2637_s23  ;;  %1084 = vrot.lane.b32.xlu1 %v902_v26, %s2637_s23  ;;  %v904_v23 = vsel %vm901_vm3, %v2902_v32, %v903_v10  ;;  %v4673_v32 = vrot.slane %v2884_v27, 4  ;;  %v4675_v10 = vrot.slane %v2894_v30, 4 }
 0x10a   : > { %v2379_v14 = vpack.c.bf16 %v1340_v57, %v1328_v17  ;;  %v2381_v5 = vpack.c.bf16 %v1339_v9, %v1327_v58  ;;  %v297_v12 = vsel %vm263_vm0, %v289_v4, %v4598_v16  ;;  %v327_v59 = vsel %vm263_vm0, %v319_v63, %v4597_v62 }
 0x10b   : > { %v3206_v28 = vpop.permute.xlu0 %336  ;;  %v3208_v19 = vpop.permute.xlu1 %338  ;;  %v298_v26 = vsel %vm4635_vm9, %v279_v1, %v297_v12  ;;  %v328_v0 = vsel %vm4575_vm10, %v309_v13, %v327_v59  ;;  %v1330_v4 = vcombine.high %v2704_v3, %v268_v11  ;;  %v1329_v63 = vcombine.low %v2704_v3, %v268_v11 }
 0x10c   : > { %2380 = vmatprep.subr.bf16.mxu0 %v2379_v14  ;;  %v1342_v31 = vcombine.high %v298_v26, %v328_v0  ;;  %v1341_v24 = vcombine.low %v298_v26, %v328_v0  ;;  %v925_v17 = vrot.slane %v2932_v39, 4  ;;  %v845_v1 = vsel %vm263_vm0, %v4673_v32, %v837_v60 }
 0x10d   : > { %1086 = vrot.lane.b32.xlu0 %v904_v23, %s2637_s23  ;;  %1052 = vrot.lane.b32.xlu1 %v815_v2, %s2637_s23  ;;  %v4674_v13 = vrot.slane %v2918_v36, 4  ;;  %v926_v3 = vrot.slane %v2934_v40, 4  ;;  %v924_v9 = vrot.slane %v2926_v38, 4  ;;  %v4676_v12 = vrot.slane %v2924_v37, 4 }
 0x10e   : > { %2382 = vmatpush1.bf16.msra.mxu0 %v2381_v5  ;;  %v2409_v58 = vpack.c.bf16 %v1342_v31, %v1330_v4  ;;  %v2411_v57 = vpack.c.bf16 %v1341_v24, %v1329_v63  ;;  %v4677_v59 = vrot.slane %v2908_v33, 4  ;;  %v954_v23 = vrot.slane %v2940_v41, 4 }
 0x10f   : > { %v875_v18 = vsel %vm263_vm0, %v4675_v10, %v4674_v13  ;;  %v367_v11 = vpop.permute.xlu0 %366  ;;  %v3233_v14 = vpop.permute.xlu1 %368  ;;  %v955_v2 = vrot.slane %v2942_v42, 4  ;;  %v846_v5 = vsel %vm841_vm8, %v2884_v27, %v845_v1  ;;  %v930_v37 = vsel %vm263_vm0, %v924_v9, %v925_v17 }
 0x110   : > { %v905_v36 = vsel %vm263_vm0, %v4677_v59, %v4676_v12  ;;  %2410 = vmatprep.subr.bf16.mxu1 %v2409_v58  ;;  %v876_v26 = vsel %vm871_vm1, %v2894_v30, %v875_v18  ;;  %v378_v0 = vrot.slane %v367_v11, 4  ;;  %v379_v4 = vrot.slane %v3233_v14, 4 }
 0x111   : > { %1064 = vrot.lane.b32.xlu0 %v846_v5, %s2637_s23  ;;  %1076 = vrot.lane.b32.xlu1 %v876_v26, %s2637_s23  ;;  %v906_v31 = vsel %vm901_vm3, %v2908_v33, %v905_v36  ;;  %v933_v27 = vsel %vm263_vm0, %v925_v17, %v926_v3  ;;  %v956_v30 = vrot.slane %v2948_v43, 4  ;;  %v984_v63 = vrot.slane %v2956_v45, 4 }
 0x112   : > { %2412 = vmatpush1.bf16.msra.mxu1 %v2411_v57  ;;  %v348_v24 = vrot.slane %v3206_v28, 4  ;;  %v349_v32 = vrot.slane %v3208_v19, 4  ;;  %v932_v33 = vsel %vm931_vm6, %v2926_v38, %v930_v37  ;;  %v960_v17 = vsel %vm263_vm0, %v954_v23, %v955_v2 }
 0x113   : > { %v397_v1 = vpop.permute.xlu0 %396  ;;  %v3259_v13 = vpop.permute.xlu1 %398  ;;  %v983_v58 = vrot.slane %v2950_v44, 4  ;;  %v384_v57 = vsel %vm263_vm0, %v378_v0, %v379_v4  ;;  %v934_v9 = vsel %vm931_vm6, %v2932_v39, %v933_v27  ;;  %vm4576_vm10 = vcmask 842752  }
 0x114   : > { %v408_v10 = vrot.slane %v397_v1, 4  ;;  %v409_v18 = vrot.slane %v3259_v13, 4  ;;  %v354_v38 = vsel %vm263_vm0, %v348_v24, %v349_v32  ;;  %v961_v36 = vsel %vm511_vm11, %v2940_v41, %v960_v17 }
 0x115   : > { %1088 = vrot.lane.b32.xlu0 %v906_v31, %s2637_s23  ;;  %1096 = vrot.lane.b32.xlu1 %v932_v33, %s2637_s23  ;;  %v962_v23 = vsel %vm263_vm0, %v955_v2, %v956_v30  ;;  %v989_v5 = vsel %vm263_vm0, %v983_v58, %v984_v63  ;;  %v386_v37 = vsel %vm4580_vm13, %v367_v11, %v384_v57  ;;  %v985_v31 = vrot.slane %v2958_v46, 4 }
 0x116   : > { %v414_v26 = vsel %vm263_vm0, %v408_v10, %v409_v18  ;;  %v963_v27 = vsel %vm511_vm11, %v2942_v42, %v962_v23  ;;  %v990_v2 = vsel %vm541_vm12, %v2950_v44, %v989_v5  ;;  %v356_v24 = vsel %vm4581_vm14, %v3206_v28, %v354_v38 }
 0x117   : > { %v427_v12 = vpop.permute.xlu0 %426  ;;  %v429_v59 = vpop.permute.xlu1 %428  ;;  %v416_v33 = vsel %vm4577_vm15, %v397_v1, %v414_v26  ;;  %v1352_v58 = vcombine.high %v356_v24, %v386_v37  ;;  %v1351_v57 = vcombine.low %v356_v24, %v386_v37  ;;  %v991_v44 = vsel %vm263_vm0, %v984_v63, %v985_v31 }
 0x118   : > { %v438_v0 = vrot.slane %v427_v12, 4  ;;  %v439_v39 = vrot.slane %v429_v59, 4  ;;  %v992_v63 = vsel %vm541_vm12, %v2956_v45, %v991_v44  ;;  %v4602_v24 = vrot.slane %v2972_v49, 4 }
 0x119   : > { %1098 = vrot.lane.b32.xlu0 %v934_v9, %s2637_s23  ;;  %1108 = vrot.lane.b32.xlu1 %v961_v36, %s2637_s23 }
 0x11a   : > { %v444_v41 = vsel %vm263_vm0, %v438_v0, %v439_v39 }
 0x11b   : > { %v3290_v10 = vpop.permute.xlu0 %340  ;;  %v3292_v11 = vpop.permute.xlu1 %370  ;;  %v446_v17 = vsel %vm4576_vm10, %v427_v12, %v444_v41 }
 0x11c   : > { %v4589_v9 = vrot.slane %v3290_v10, 4  ;;  %v4588_v42 = vrot.slane %v3292_v11, 4  ;;  %v1364_v36 = vcombine.high %v416_v33, %v446_v17  ;;  %v1363_v23 = vcombine.low %v416_v33, %v446_v17 }
 0x11d   : > { %1110 = vrot.lane.b32.xlu0 %v963_v27, %s2637_s23  ;;  %1120 = vrot.lane.b32.xlu1 %v990_v2, %s2637_s23  ;;  %v4590_v2 = vmov 0.0  }
 0x11e   : > { %v357_v28 = vsel %vm263_vm0, %v349_v32, %v4589_v9  ;;  %v387_v1 = vsel %vm263_vm0, %v379_v4, %v4588_v42  ;;  %v2383_v38 = vpack.c.bf16 %v1364_v36, %v1352_v58  ;;  %v2385_v12 = vpack.c.bf16 %v1363_v23, %v1351_v57  ;;  %1737 = vmatprep.mubr.f32.mxu0 %v4590_v2 }
 0x11f   : > { %v3307_v5 = vpop.permute.xlu0 %400  ;;  %v3309_v26 = vpop.permute.xlu1 %430  ;;  %v957_v32 = vrot.slane %v2966_v48, 4  ;;  %v358_v4 = vsel %vm4581_vm14, %v3208_v19, %v357_v28  ;;  %v388_v41 = vsel %vm4580_vm13, %v3233_v14, %v387_v1  ;;  %1808 = vmatprep.mubr.f32.mxu1 %v4590_v2  ;;  %v4678_v36 = vrot.slane %v2964_v47, 4  ;;  %v3468_v2 = vld [vmem:[%s2688_s24 + $0x24] sm:$0xff] }
 0x120   : > { %v4587_v0 = vrot.slane %v3307_v5, 4  ;;  %v4586_v37 = vrot.slane %v3309_v26, 4  ;;  %2384 = vmatprep.subr.bf16.mxu0 %v2383_v38  ;;  %v1353_v57 = vcombine.low %v358_v4, %v388_v41  ;;  %vm4618_vm13 = vcmask 801792  }
 0x121   : > { %1122 = vrot.lane.b32.xlu0 %v992_v63, %s2637_s23  ;;  %251 = vrot.lane.b32.xlu1 %v2722_v6, %s2615_s25  ;;  %vm4596_vm14 = vcmask 719872  }
 0x122   : > { %v417_v27 = vsel %vm263_vm0, %v409_v18, %v4587_v0  ;;  %v447_v45 = vsel %vm263_vm0, %v439_v39, %v4586_v37  ;;  %2386 = vmatpush1.bf16.msra.mxu0 %v2385_v12  ;;  %v1354_v18 = vcombine.high %v358_v4, %v388_v41 }
 0x123   : > { %v457_v33 = vpop.permute.xlu0 %456  ;;  %v3331_v17 = vpop.permute.xlu1 %458  ;;  %v418_v19 = vsel %vm4577_vm15, %v3259_v13, %v417_v27  ;;  %v448_v14 = vsel %vm4576_vm10, %v429_v59, %v447_v45  ;;  %v935_v13 = vsel %vm263_vm0, %v926_v3, %v4678_v36  ;;  %v964_v59 = vsel %vm263_vm0, %v956_v30, %v957_v32 }
 0x124   : > { %v1366_v58 = vcombine.high %v418_v19, %v448_v14  ;;  %v1365_v39 = vcombine.low %v418_v19, %v448_v14  ;;  %v936_v38 = vsel %vm931_vm6, %v2934_v40, %v935_v13  ;;  %v965_v47 = vsel %vm511_vm11, %v2948_v43, %v964_v59 }
 0x125   : > { %282 = vrot.lane.b32.xlu0 %v2722_v6, %s2625_s10  ;;  %312 = vrot.lane.b32.xlu1 %v2722_v6, %s2626_s11  ;;  %v993_v3 = vsel %vm263_vm0, %v985_v31, %v4602_v24  ;;  %v468_v41 = vrot.slane %v457_v33, 4  ;;  %v469_v43 = vrot.slane %v3331_v17, 4  ;;  %vm4579_vm10 = vcmask 834560  }
 0x126   : > { %v2413_v23 = vpack.c.bf16 %v1366_v58, %v1354_v18  ;;  %v2415_v44 = vpack.c.bf16 %v1365_v39, %v1353_v57  ;;  %v994_v40 = vsel %vm541_vm12, %v2958_v46, %v993_v3  ;;  %vm4578_vm15 = vcmask 900096  }
 0x127   : > { %v493_v28 = vpop.permute.xlu0 %492  ;;  %v3351_v1 = vpop.permute.xlu1 %494  ;;  %v474_v18 = vsel %vm263_vm0, %v468_v41, %v469_v43 }
 0x128   : > { %2414 = vmatprep.subr.bf16.mxu1 %v2413_v23  ;;  %v504_v30 = vrot.slane %v493_v28, 4  ;;  %v505_v12 = vrot.slane %v3351_v1, 4  ;;  %v476_v23 = vsel %vm4579_vm10, %v457_v33, %v474_v18 }
 0x129   : > { %1100 = vrot.lane.b32.xlu0 %v936_v38, %s2637_s23  ;;  %1112 = vrot.lane.b32.xlu1 %v965_v47, %s2637_s23 }
 0x12a   : > { %2416 = vmatpush1.bf16.msra.mxu1 %v2415_v44  ;;  %v510_v31 = vsel %vm263_vm0, %v504_v30, %v505_v12 }
 0x12b   : > { %v523_v63 = vpop.permute.xlu0 %522  ;;  %v525_v4 = vpop.permute.xlu1 %524  ;;  %v512_v39 = vsel %vm511_vm11, %v493_v28, %v510_v31 }
 0x12c   : > { %v534_v27 = vrot.slane %v523_v63, 4  ;;  %v535_v45 = vrot.slane %v525_v4, 4  ;;  %v1376_v47 = vcombine.high %v476_v23, %v512_v39  ;;  %v1375_v30 = vcombine.low %v476_v23, %v512_v39 }
 0x12d   : > { %1124 = vrot.lane.b32.xlu0 %v994_v40, %s2637_s23  ;;  %253 = vrot.lane.b32.xlu1 %v2753_v7, %s2615_s25 }
 0x12e   : > { %v540_v46 = vsel %vm263_vm0, %v534_v27, %v535_v45 }
 0x12f   : > { %v553_v19 = vpop.permute.xlu0 %552  ;;  %v555_v14 = vpop.permute.xlu1 %554  ;;  %v542_v44 = vsel %vm541_vm12, %v523_v63, %v540_v46 }
 0x130   : > { %v564_v58 = vrot.slane %v553_v19, 4  ;;  %v565_v57 = vrot.slane %v555_v14, 4 }
 0x131   : > { %284 = vrot.lane.b32.xlu0 %v2753_v7, %s2625_s10  ;;  %314 = vrot.lane.b32.xlu1 %v2753_v7, %s2626_s11 }
 0x132   : > { %v570_v36 = vsel %vm263_vm0, %v564_v58, %v565_v57 }
 0x133   : > { %v3378_v13 = vpop.permute.xlu0 %742  ;;  %v3380_v59 = vpop.permute.xlu1 %772  ;;  %v572_v38 = vsel %vm4578_vm15, %v553_v19, %v570_v36 }
 0x134   : > { %v1388_v3 = vcombine.high %v542_v44, %v572_v38  ;;  %v1387_v40 = vcombine.low %v542_v44, %v572_v38 }
 0x135   : > { %342 = vrot.lane.b32.xlu0 %v2722_v6, %s2627_s12  ;;  %372 = vrot.lane.b32.xlu1 %v2722_v6, %s2628_s13 }
 0x136   : > { %v2387_v28 = vpack.c.bf16 %v1388_v3, %v1376_v47  ;;  %v2389_v41 = vpack.c.bf16 %v1387_v40, %v1375_v30 }
 0x137   : > { %v3389_v27 = vpop.permute.xlu0 %460  ;;  %v3391_v31 = vpop.permute.xlu1 %496 }
 0x138   : > { %v4585_v33 = vrot.slane %v3389_v27, 4  ;;  %v4584_v63 = vrot.slane %v3391_v31, 4  ;;  %2388 = vmatprep.subr.bf16.mxu0 %v2387_v28 }
 0x139   : > { %402 = vrot.lane.b32.xlu0 %v2722_v6, %s2629_s14  ;;  %432 = vrot.lane.b32.xlu1 %v2722_v6, %s2630_s15 }
 0x13a   : > { %v477_v19 = vsel %vm263_vm0, %v469_v43, %v4585_v33  ;;  %v513_v18 = vsel %vm263_vm0, %v505_v12, %v4584_v63  ;;  %2390 = vmatpush1.bf16.msra.mxu0 %v2389_v41 }
 0x13b   : > { %v3405_v46 = vpop.permute.xlu0 %526  ;;  %v3407_v58 = vpop.permute.xlu1 %556  ;;  %v478_v6 = vsel %vm4579_vm10, %v3331_v17, %v477_v19  ;;  %v514_v12 = vsel %vm511_vm11, %v3351_v1, %v513_v18  ;;  %v3436_v19 = vld [vmem:[%s2688_s24 + $0x18] sm:$0xff]  ;;  %vm601_vm10 = vcmask 818176  }
 0x13c   : > { %v4583_v39 = vrot.slane %v3405_v46, 4  ;;  %v4582_v36 = vrot.slane %v3407_v58, 4  ;;  %v1378_v3 = vcombine.high %v478_v6, %v514_v12  ;;  %v1377_v1 = vcombine.low %v478_v6, %v514_v12 }
 0x13d   : > { %344 = vrot.lane.b32.xlu0 %v2753_v7, %s2627_s12  ;;  %374 = vrot.lane.b32.xlu1 %v2753_v7, %s2628_s13 }
 0x13e   : > { %v543_v43 = vsel %vm263_vm0, %v535_v45, %v4583_v39  ;;  %v573_v23 = vsel %vm263_vm0, %v565_v57, %v4582_v36  ;;  %v2600_v36 = vld [vmem:[%s2688_s24 + $0x20] sm:$0xff] }
 0x13f   : > { %v583_v44 = vpop.permute.xlu0 %582  ;;  %v3425_v38 = vpop.permute.xlu1 %584  ;;  %v544_v47 = vsel %vm541_vm12, %v525_v4, %v543_v43  ;;  %v574_v17 = vsel %vm4578_vm15, %v555_v14, %v573_v23  ;;  %v3441_v4 = vld [vmem:[%s2688_s24 + $0x1c] sm:$0xff]  ;;  %vm4619_vm15 = vcmask 809984  }
 0x140   : > { %v1390_v30 = vcombine.high %v544_v47, %v574_v17  ;;  %v1389_v40 = vcombine.low %v544_v47, %v574_v17  ;;  %v594_v12 = vrot.slane %v583_v44, 4  ;;  %v595_v43 = vrot.slane %v3425_v38, 4 }
 0x141   : > { %404 = vrot.lane.b32.xlu0 %v2753_v7, %s2629_s14  ;;  %434 = vrot.lane.b32.xlu1 %v2753_v7, %s2630_s15 }
 0x142   : > { %v2417_v45 = vpack.c.bf16 %v1390_v30, %v1378_v3  ;;  %v2419_v57 = vpack.c.bf16 %v1389_v40, %v1377_v1  ;;  %v600_v1 = vsel %vm263_vm0, %v594_v12, %v595_v43 }
 0x143   : > { %v613_v28 = vpop.permute.xlu0 %612  ;;  %v3433_v41 = vpop.permute.xlu1 %614  ;;  %v602_v12 = vsel %vm601_vm10, %v583_v44, %v600_v1 }
 0x144   : > { %2418 = vmatprep.subr.bf16.mxu1 %v2417_v45  ;;  %v624_v14 = vrot.slane %v613_v28, 4  ;;  %v625_v18 = vrot.slane %v3433_v41, 4 }
 0x145   : > { %462 = vrot.lane.b32.xlu0 %v3436_v19, %s2631_s16  ;;  %498 = vrot.lane.b32.xlu1 %v3441_v4, %s2623_s8 }
 0x146   : > { %2420 = vmatpush1.bf16.msra.mxu1 %v2419_v57  ;;  %v630_v17 = vsel %vm263_vm0, %v624_v14, %v625_v18 }
 0x147   : > { %v643_v7 = vpop.permute.xlu0 %642  ;;  %v645_v6 = vpop.permute.xlu1 %644  ;;  %v632_v14 = vsel %vm4619_vm15, %v613_v28, %v630_v17 }
 0x148   : > { %v654_v23 = vrot.slane %v643_v7, 4  ;;  %v655_v47 = vrot.slane %v645_v6, 4  ;;  %v1400_v0 = vcombine.high %v602_v12, %v632_v14 }
 0x149   : > { %528 = vrot.lane.b32.xlu0 %v3441_v4, %s2624_s9  ;;  %558 = vrot.lane.b32.xlu1 %v3441_v4, %s2632_s17 }
 0x14a   : > { %v660_v40 = vsel %vm263_vm0, %v654_v23, %v655_v47 }
 0x14b   : > { %v673_v3 = vpop.permute.xlu0 %672  ;;  %v675_v30 = vpop.permute.xlu1 %674  ;;  %v662_v23 = vsel %vm4618_vm13, %v643_v7, %v660_v40 }
 0x14c   : > { %v684_v45 = vrot.slane %v673_v3, 4  ;;  %v685_v57 = vrot.slane %v675_v30, 4 }
 0x14d   : > { %464 = vrot.lane.b32.xlu0 %v2600_v36, %s2631_s16  ;;  %500 = vrot.lane.b32.xlu1 %v2784_v8, %s2623_s8  ;;  %v1399_v36 = vcombine.low %v602_v12, %v632_v14 }
 0x14e   : > { %v690_v39 = vsel %vm263_vm0, %v684_v45, %v685_v57 }
 0x14f   : > { %v3460_v63 = vpop.permute.xlu0 %802  ;;  %v3462_v33 = vpop.permute.xlu1 %586  ;;  %v692_v37 = vsel %vm4596_vm14, %v673_v3, %v690_v39 }
 0x150   : > { %v1412_v42 = vcombine.high %v662_v23, %v692_v37  ;;  %v1411_v9 = vcombine.low %v662_v23, %v692_v37  ;;  %v4595_v39 = vrot.slane %v3462_v33, 4 }
 0x151   : > { %530 = vrot.lane.b32.xlu0 %v3468_v2, %s2624_s9  ;;  %560 = vrot.lane.b32.xlu1 %v3468_v2, %s2632_s17 }
 0x152   : > { %v2391_v8 = vpack.c.bf16 %v1412_v42, %v1400_v0  ;;  %v2393_v28 = vpack.c.bf16 %v1411_v9, %v1399_v36  ;;  %v603_v3 = vsel %vm263_vm0, %v595_v43, %v4595_v39  ;;  %v718_v43 = vrot.slane %v2974_v50, 4 }
 0x153   : > { %v3474_v17 = vpop.permute.xlu0 %616  ;;  %v3476_v44 = vpop.permute.xlu1 %646  ;;  %v604_v12 = vsel %vm601_vm10, %v3425_v38, %v603_v3  ;;  %v747_v38 = vrot.slane %v2980_v51, 4  ;;  %v4601_v39 = vrot.slane %v2990_v54, 4 }
 0x154   : > { %v4594_v7 = vrot.slane %v3474_v17, 4  ;;  %v4592_v37 = vrot.slane %v3476_v44, 4  ;;  %2392 = vmatprep.subr.bf16.mxu0 %v2391_v8 }
 0x155   : > { %588 = vrot.lane.b32.xlu0 %v3441_v4, %s2633_s18  ;;  %618 = vrot.lane.b32.xlu1 %v3441_v4, %s2634_s19 }
 0x156   : > { %v633_v9 = vsel %vm263_vm0, %v625_v18, %v4594_v7  ;;  %2394 = vmatpush1.bf16.msra.mxu0 %v2393_v28  ;;  %v663_v1 = vsel %vm263_vm0, %v655_v47, %v4592_v37 }
 0x157   : > { %v3488_v42 = vpop.permute.xlu0 %676  ;;  %v3490_v0 = vpop.permute.xlu1 %1000  ;;  %v634_v18 = vsel %vm4619_vm15, %v3433_v41, %v633_v9  ;;  %v664_v23 = vsel %vm4618_vm13, %v645_v6, %v663_v1  ;;  %v777_v1 = vrot.slane %v2982_v52, 4  ;;  %vm2639_vm13 = vmmov 1  }
 0x158   : > { %v4593_v40 = vrot.slane %v3488_v42, 4  ;;  %v1402_v8 = vcombine.high %v604_v12, %v634_v18  ;;  %v1401_v37 = vcombine.low %v604_v12, %v634_v18  ;;  %vm3810_vm15 = vmpackc.low %vm263_vm0, %vm2639_vm13  ;;  %vm4713_vm13 = vcmask 949248  }
 0x159   : > { %648 = vrot.lane.b32.xlu0 %v3441_v4, %s2635_s4  ;;  %678 = vrot.lane.b32.xlu1 %v3441_v4, %s2636_s22 }
 0x15a   : > { %v693_v45 = vsel %vm263_vm0, %v685_v57, %v4593_v40 }
 0x15b   : > { %v3509_v14 = vpop.permute.xlu0 %1002  ;;  %v1013_v47 = vpop.permute.xlu1 %1012  ;;  %v694_v36 = vsel %vm4596_vm14, %v675_v30, %v693_v45  ;;  %v4679_v30 = vrot.slane %v2854_v20, 4  ;;  %vm4632_vm14 = vcmask 711680  }
 0x15c   : > { %v1414_v28 = vcombine.high %v664_v23, %v694_v36  ;;  %v1413_v41 = vcombine.low %v664_v23, %v694_v36  ;;  %v1133_v18 = vrot.slane %v3509_v14, 4  ;;  %v1138_v45 = vrot.slane %v1013_v47, 4 }
 0x15d   : > { %590 = vrot.lane.b32.xlu0 %v3468_v2, %s2633_s18  ;;  %620 = vrot.lane.b32.xlu1 %v3468_v2, %s2634_s19  ;;  %v726_v3 = vsel %vm263_vm0, %v4679_v30, %v718_v43 }
 0x15e   : > { %v2421_v57 = vpack.c.bf16 %v1414_v28, %v1402_v8  ;;  %v2423_v9 = vpack.c.bf16 %v1413_v41, %v1401_v37  ;;  %v4600_v37 = vrot.slane %v2988_v53, 4  ;;  %v727_v36 = vsel %vm265_vm2, %v2854_v20, %v726_v3 }
 0x15f   : > { %v3519_v40 = vpop.permute.xlu0 %1014  ;;  %v1025_v7 = vpop.permute.xlu1 %1024  ;;  %v1132_v8 = vrot.slane %v3490_v0, 4 }
 0x160   : > { %v1139_v6 = vrot.slane %v3519_v40, 4  ;;  %2422 = vmatprep.subr.bf16.mxu1 %v2421_v57  ;;  %v4680_v57 = vrot.slane %v2860_v21, 4  ;;  %v728_v21 = vsel %vm263_vm0, %v718_v43, %v4600_v37 }
 0x161   : > { %650 = vrot.lane.b32.xlu0 %v3468_v2, %s2635_s4  ;;  %680 = vrot.lane.b32.xlu1 %v3468_v2, %s2636_s22  ;;  %v1198_v3 = vsel %vm263_vm0, %v1132_v8, %v1133_v18  ;;  %v729_v43 = vsel %vm265_vm2, %v2974_v50, %v728_v21 }
 0x162   : > { %2424 = vmatpush1.bf16.msra.mxu1 %v2423_v9  ;;  %v1210_v28 = vsel %vm263_vm0, %v1138_v45, %v1139_v6  ;;  %v756_v30 = vsel %vm263_vm0, %v4680_v57, %v747_v38  ;;  %v4681_v9 = vrot.slane %v2862_v22, 4  ;;  %v1144_v45 = vrot.slane %v1025_v7, 4 }
 0x163   : > { %v3533_v12 = vpop.permute.xlu0 %1026  ;;  %v1037_v23 = vpop.permute.xlu1 %1036 }
 0x164   : > { %v1145_v41 = vrot.slane %v3533_v12, 4  ;;  %v786_v20 = vsel %vm263_vm0, %v4681_v9, %v777_v1  ;;  %v1150_v16 = vrot.slane %v1037_v23, 4 }
 0x165   : > { %1006 = vrot.lane.b32.xlu0 %v3441_v4, %s2637_s23  ;;  %1018 = vrot.lane.b32.xlu1 %v727_v36, %s2637_s23  ;;  %v757_v4 = vsel %vm750_vm4, %v756_v30, %v2980_v51  ;;  %v1211_v36 = vsel %vm4632_vm14, %v1013_v47, %v1210_v28  ;;  %v787_v8 = vsel %vm780_vm5, %v786_v20, %v2982_v52  ;;  %v807_v28 = vrot.slane %v2998_v56, 4  ;;  %v4682_v30 = vld [vmem:[#allocation3_spill] sm:$0xff] }
 0x166   : > { %v1221_v22 = vsel %vm263_vm0, %v1144_v45, %v1145_v41  ;;  %v1200_v51 = vsel %vm4632_vm14, %v3490_v0, %v1198_v3  ;;  %v758_v47 = vsel %vm263_vm0, %v747_v38, %v4601_v39  ;;  %v838_v52 = vrot.slane %v4682_v30, 4 }
 0x167   : > { %v1039_v57 = vpop.permute.xlu0 %1038  ;;  %v3554_v62 = vpop.permute.xlu1 %1004  ;;  %v1424_v45 = vcombine.high %v1200_v51, %v1211_v36  ;;  %v1222_v50 = vsel %vm4632_vm14, %v1025_v7, %v1221_v22  ;;  %v1423_v3 = vcombine.low %v1200_v51, %v1211_v36 }
 0x168   : > { %v1151_v9 = vrot.slane %v1039_v57, 4 }
 0x169   : > { %1030 = vrot.lane.b32.xlu0 %v757_v4, %s2637_s23  ;;  %1042 = vrot.lane.b32.xlu1 %v787_v8, %s2637_s23  ;;  %v4606_v4 = vrot.slane %v3554_v62, 4 }
 0x16a   : > { %v1232_v20 = vsel %vm263_vm0, %v1150_v16, %v1151_v9  ;;  %v788_v16 = vsel %vm263_vm0, %v777_v1, %v4611_v25  ;;  %v847_v1 = vsel %vm263_vm0, %v837_v60, %v838_v52 }
 0x16b   : > { %v3576_v8 = vpop.permute.xlu0 %1016  ;;  %v3578_v37 = vpop.permute.xlu1 %1028  ;;  %v1233_v0 = vsel %vm4632_vm14, %v1037_v23, %v1232_v20  ;;  %v759_v20 = vsel %vm750_vm4, %v758_v47, %v2990_v54  ;;  %v848_v47 = vsel %vm841_vm8, %v2916_v35, %v847_v1  ;;  %v4686_v1 = vld [vmem:[#allocation9_spill] sm:$0xff] }
 0x16c   : > { %v4605_v38 = vrot.slane %v3576_v8, 4  ;;  %v4604_v21 = vrot.slane %v3578_v37, 4  ;;  %v1436_v39 = vcombine.high %v1222_v50, %v1233_v0  ;;  %v1435_v24 = vcombine.low %v1222_v50, %v1233_v0 }
 0x16d   : > { %1008 = vrot.lane.b32.xlu0 %v3468_v2, %s2637_s23  ;;  %1020 = vrot.lane.b32.xlu1 %v729_v43, %s2637_s23  ;;  %v4683_v2 = vrot.slane %v2910_v34, 4  ;;  %v789_v34 = vsel %vm780_vm5, %v788_v16, %v2996_v55 }
 0x16e   : > { %v1212_v7 = vsel %vm263_vm0, %v1139_v6, %v4605_v38  ;;  %v2395_v23 = vpack.c.bf16 %v1436_v39, %v1424_v45  ;;  %v2397_v36 = vpack.c.bf16 %v1435_v24, %v1423_v3  ;;  %v1201_v39 = vsel %vm263_vm0, %v1133_v18, %v4606_v4  ;;  %v4684_v45 = vld [vmem:[#allocation6_spill] sm:$0xff] }
 0x16f   : > { %v3593_v22 = vpop.permute.xlu0 %1040  ;;  %v3595_v51 = vpop.permute.xlu1 %1048  ;;  %v816_v43 = vsel %vm263_vm0, %v4683_v2, %v807_v28  ;;  %v1223_v24 = vsel %vm263_vm0, %v1145_v41, %v4604_v21  ;;  %v1213_v60 = vsel %vm4632_vm14, %v3519_v40, %v1212_v7  ;;  %v4610_v50 = vrot.slane %v4684_v45, 4 }
 0x170   : > { %v4603_v6 = vrot.slane %v3593_v22, 4  ;;  %2396 = vmatprep.subr.bf16.mxu0 %v2395_v23  ;;  %v817_v41 = vsel %vm810_vm7, %v816_v43, %v2998_v56  ;;  %v1202_v16 = vsel %vm4632_vm14, %v3509_v14, %v1201_v39  ;;  %v1224_v40 = vsel %vm4632_vm14, %v3533_v12, %v1223_v24  ;;  %v4687_v24 = vld [vmem:[#allocation11_spill] sm:$0xff] }
 0x171   : > { %1032 = vrot.lane.b32.xlu0 %v759_v20, %s2637_s23  ;;  %1044 = vrot.lane.b32.xlu1 %v789_v34, %s2637_s23  ;;  %v1426_v7 = vcombine.high %v1202_v16, %v1213_v60  ;;  %v4685_v20 = vld [vmem:[#allocation8_spill] sm:$0xff]  ;;  %v4607_v34 = vrot.slane %v4686_v1, 4 }
 0x172   : > { %v1234_v18 = vsel %vm263_vm0, %v1151_v9, %v4603_v6  ;;  %2398 = vmatpush1.bf16.msra.mxu0 %v2397_v36  ;;  %v1425_v36 = vcombine.low %v1202_v16, %v1213_v60  ;;  %v4608_v2 = vrot.slane %v4685_v20, 4  ;;  %v4609_v60 = vrot.slane %v4687_v24, 4 }
 0x173   : > { %v3626_v0 = vpop.permute.xlu0 %1050  ;;  %v1061_v3 = vpop.permute.xlu1 %1060  ;;  %v1235_v9 = vsel %vm4632_vm14, %v1039_v57, %v1234_v18  ;;  %v818_v57 = vsel %vm263_vm0, %v807_v28, %v4610_v50  ;;  %v4688_v18 = vld [vmem:[#allocation7_spill] sm:$0xff] }
 0x174   : > { %v1438_v23 = vcombine.high %v1224_v40, %v1235_v9  ;;  %v1437_v56 = vcombine.low %v1224_v40, %v1235_v9  ;;  %v1157_v16 = vrot.slane %v3626_v0, 4  ;;  %v1162_v40 = vrot.slane %v1061_v3, 4  ;;  %v4690_v9 = vld [vmem:[#allocation13_spill] sm:$0xff] }
 0x175   : > { %1054 = vrot.lane.b32.xlu0 %v817_v41, %s2637_s23  ;;  %1066 = vrot.lane.b32.xlu1 %v848_v47, %s2637_s23  ;;  %v4689_v41 = vld [vmem:[#allocation10_spill] sm:$0xff]  ;;  %v849_v47 = vsel %vm263_vm0, %v838_v52, %v4608_v2  ;;  %v1156_v52 = vrot.slane %v3595_v51, 4 }
 0x176   : > { %v2425_v35 = vpack.c.bf16 %v1438_v23, %v1426_v7  ;;  %v2427_v43 = vpack.c.bf16 %v1437_v56, %v1425_v36  ;;  %v958_v7 = vrot.slane %v4690_v9, 4  ;;  %v819_v36 = vsel %vm810_vm7, %v818_v57, %v4684_v45  ;;  %v4691_v56 = vld [vmem:[#allocation4_spill] sm:$0xff]  ;;  %v4693_v57 = vld [vmem:[#allocation5_spill] sm:$0xff] }
 0x177   : > { %v3637_v14 = vpop.permute.xlu0 %1062  ;;  %v1073_v39 = vpop.permute.xlu1 %1072  ;;  %v850_v6 = vsel %vm841_vm8, %v4682_v30, %v849_v47  ;;  %v4694_v21 = vrot.slane %v4693_v57, 4 }
 0x178   : > { %v1163_v12 = vrot.slane %v3637_v14, 4  ;;  %2426 = vmatprep.subr.bf16.mxu1 %v2425_v35  ;;  %v4692_v35 = vrot.slane %v4691_v56, 4  ;;  %v1168_v4 = vrot.slane %v1073_v39, 4  ;;  %v966_v30 = vsel %vm263_vm0, %v957_v32, %v958_v7 }
 0x179   : > { %1078 = vrot.lane.b32.xlu0 %v4688_v18, %s2637_s23  ;;  %1090 = vrot.lane.b32.xlu1 %v4689_v41, %s2637_s23  ;;  %v909_v38 = vsel %vm263_vm0, %v4694_v21, %v4609_v60  ;;  %v4696_v60 = vld [vmem:[#allocation14_spill] sm:$0xff] }
 0x17a   : > { %2428 = vmatpush1.bf16.msra.mxu1 %v2427_v43  ;;  %v879_v18 = vsel %vm263_vm0, %v4692_v35, %v4607_v34  ;;  %v1254_v41 = vsel %vm263_vm0, %v1162_v40, %v1163_v12  ;;  %v1243_v35 = vsel %vm263_vm0, %v1156_v52, %v1157_v16  ;;  %v910_v52 = vsel %vm901_vm3, %v4693_v57, %v909_v38 }
 0x17b   : > { %v3653_v23 = vpop.permute.xlu0 %1074  ;;  %v1085_v28 = vpop.permute.xlu1 %1084  ;;  %v880_v2 = vsel %vm871_vm1, %v4691_v56, %v879_v18  ;;  %v4612_v50 = vrot.slane %v4696_v60, 4  ;;  %v1244_v56 = vsel %vm4632_vm14, %v3595_v51, %v1243_v35 }
 0x17c   : > { %v1169_v43 = vrot.slane %v3653_v23, 4  ;;  %v1174_v21 = vrot.slane %v1085_v28, 4 }
 0x17d   : > { %1056 = vrot.lane.b32.xlu0 %v819_v36, %s2637_s23  ;;  %1068 = vrot.lane.b32.xlu1 %v850_v6, %s2637_s23  ;;  %v1255_v6 = vsel %vm4632_vm14, %v1061_v3, %v1254_v41  ;;  %v967_v3 = vsel %vm511_vm11, %v2966_v48, %v966_v30  ;;  %v4699_v48 = vld [vmem:[#allocation15_spill] sm:$0xff]  ;;  %v4700_v30 = vrot.slane %v2972_v49, 4 }
 0x17e   : > { %v1265_v47 = vsel %vm263_vm0, %v1168_v4, %v1169_v43  ;;  %v1448_v4 = vcombine.high %v1244_v56, %v1255_v6 }
 0x17f   : > { %v1087_v34 = vpop.permute.xlu0 %1086  ;;  %v3675_v40 = vpop.permute.xlu1 %1052  ;;  %v1266_v57 = vsel %vm4632_vm14, %v1073_v39, %v1265_v47  ;;  %v995_v39 = vsel %vm263_vm0, %v4700_v30, %v4612_v50 }
 0x180   : > { %4695 = vst [vmem:[#allocation3_spill] sm:$0xff] %v3675_v40  ;;  %v1175_v36 = vrot.slane %v1087_v34, 4  ;;  %v4616_v18 = vrot.slane %v3675_v40, 4  ;;  %v996_v50 = vsel %vm541_vm12, %v2972_v49, %v995_v39  ;;  %v4704_v49 = vld [vmem:[#allocation12_spill] sm:$0xff] }
 0x181   : > { %1080 = vrot.lane.b32.xlu0 %v880_v2, %s2637_s23  ;;  %1092 = vrot.lane.b32.xlu1 %v910_v52, %s2637_s23  ;;  %v1447_v52 = vcombine.low %v1244_v56, %v1255_v6 }
 0x182   : > { %v1276_v32 = vsel %vm263_vm0, %v1174_v21, %v1175_v36 }
 0x183   : > { %v3697_v41 = vpop.permute.xlu0 %1064  ;;  %v3699_v38 = vpop.permute.xlu1 %1076  ;;  %v1277_v2 = vsel %vm4632_vm14, %v1085_v28, %v1276_v32  ;;  %v4701_v28 = vld [vmem:[#allocation16_spill] sm:$0xff] }
 0x184   : > { %4697 = vst [vmem:[#allocation6_spill] sm:$0xff] %v3697_v41  ;;  %4698 = vst [vmem:[#allocation8_spill] sm:$0xff] %v3699_v38  ;;  %v4614_v25 = vrot.slane %v3697_v41, 4  ;;  %v4613_v51 = vrot.slane %v3699_v38, 4  ;;  %v1460_v35 = vcombine.high %v1266_v57, %v1277_v2  ;;  %v1459_v21 = vcombine.low %v1266_v57, %v1277_v2 }
 0x185   : > { %1102 = vrot.lane.b32.xlu0 %v4699_v48, %s2637_s23  ;;  %1114 = vrot.lane.b32.xlu1 %v967_v3, %s2637_s23  ;;  %v4621_v6 = vrot.slane %v4701_v28, 4  ;;  %v1245_v3 = vsel %vm263_vm0, %v1157_v16, %v4616_v18 }
 0x186   : > { %v1256_v47 = vsel %vm263_vm0, %v1163_v12, %v4614_v25  ;;  %v2399_v56 = vpack.c.bf16 %v1460_v35, %v1448_v4  ;;  %v2401_v32 = vpack.c.bf16 %v1459_v21, %v1447_v52  ;;  %v1267_v48 = vsel %vm263_vm0, %v1169_v43, %v4613_v51  ;;  %v4703_v12 = vld [vmem:[#allocation17_spill] sm:$0xff]  ;;  %v3731_v52 = vld [vmem:[%s2688_s24 + $0x28] sm:$0xff] }
 0x187   : > { %v3717_v57 = vpop.permute.xlu0 %1088  ;;  %v1097_v2 = vpop.permute.xlu1 %1096  ;;  %v4620_v4 = vrot.slane %v4703_v12, 4  ;;  %v1257_v16 = vsel %vm4632_vm14, %v3637_v14, %v1256_v47  ;;  %v4705_v35 = vrot.slane %v4704_v49, 4  ;;  %v1246_v25 = vsel %vm4632_vm14, %v3626_v0, %v1245_v3 }
 0x188   : > { %4702 = vst [vmem:[#allocation9_spill] sm:$0xff] %v3717_v57  ;;  %v4615_v30 = vrot.slane %v3717_v57, 4  ;;  %2400 = vmatprep.subr.bf16.mxu0 %v2399_v56  ;;  %v1268_v14 = vsel %vm4632_vm14, %v3653_v23, %v1267_v48  ;;  %v1450_v47 = vcombine.high %v1246_v25, %v1257_v16 }
 0x189   : > { %1126 = vrot.lane.b32.xlu0 %v996_v50, %s2637_s23  ;;  %255 = vrot.lane.b32.xlu1 %v3731_v52, %s2615_s25  ;;  %v939_v21 = vsel %vm263_vm0, %v4705_v35, %v4621_v6  ;;  %v4706_v50 = vld [vmem:[#allocation18_spill] sm:$0xff]  ;;  %v968_v0 = vsel %vm263_vm0, %v958_v7, %v4620_v4  ;;  %v4707_v7 = vrot.slane %v4696_v60, 4 }
 0x18a   : > { %v1278_v43 = vsel %vm263_vm0, %v1175_v36, %v4615_v30  ;;  %2402 = vmatpush1.bf16.msra.mxu0 %v2401_v32  ;;  %v4617_v39 = vrot.slane %v4706_v50, 4  ;;  %v1449_v30 = vcombine.low %v1246_v25, %v1257_v16  ;;  %v940_v16 = vsel %vm931_vm6, %v4704_v49, %v939_v21 }
 0x18b   : > { %v3746_v56 = vpop.permute.xlu0 %1098  ;;  %v1109_v51 = vpop.permute.xlu1 %1108  ;;  %v1279_v36 = vsel %vm4632_vm14, %v1087_v34, %v1278_v43 }
 0x18c   : > { %v1462_v32 = vcombine.high %v1268_v14, %v1279_v36  ;;  %v1461_v18 = vcombine.low %v1268_v14, %v1279_v36  ;;  %v1181_v34 = vrot.slane %v3746_v56, 4  ;;  %v1186_v43 = vrot.slane %v1109_v51, 4 }
 0x18d   : > { %286 = vrot.lane.b32.xlu0 %v3731_v52, %s2625_s10  ;;  %316 = vrot.lane.b32.xlu1 %v3731_v52, %s2626_s11  ;;  %v969_v14 = vsel %vm511_vm11, %v4690_v9, %v968_v0  ;;  %s2560_s10 = smul.u32 96, %s4851_s21 }
 0x18e   : > { %v2429_v3 = vpack.c.bf16 %v1462_v32, %v1450_v47  ;;  %v2431_v23 = vpack.c.bf16 %v1461_v18, %v1449_v30  ;;  %v997_v18 = vsel %vm263_vm0, %v4707_v7, %v4617_v39  ;;  %v1180_v30 = vrot.slane %v1097_v2, 4 }
 0x18f   : > { %v3763_v48 = vpop.permute.xlu0 %1110  ;;  %v1121_v25 = vpop.permute.xlu1 %1120  ;;  %v998_v9 = vsel %vm541_vm12, %v4696_v60, %v997_v18  ;;  %s225_s21 = scalar_lea.vmem %s4551_s5, %s2560_s10 }
 0x190   : > { %v1187_v35 = vrot.slane %v3763_v48, 4  ;;  %2430 = vmatprep.subr.bf16.mxu1 %v2429_v3  ;;  %v1287_v21 = vsel %vm263_vm0, %v1180_v30, %v1181_v34  ;;  %v1192_v0 = vrot.slane %v1121_v25, 4 }
 0x191   : > { %1104 = vrot.lane.b32.xlu0 %v940_v16, %s2637_s23  ;;  %1116 = vrot.lane.b32.xlu1 %v969_v14, %s2637_s23  ;;  %v4708_v14 = vrot.slane %v3160_v61, 4 }
 0x192   : > { %v1298_v49 = vsel %vm263_vm0, %v1186_v43, %v1187_v35  ;;  %2432 = vmatpush1.bf16.msra.mxu1 %v2431_v23  ;;  %v1288_v23 = vsel %vm4632_vm14, %v1097_v2, %v1287_v21 }
 0x193   : > { %v3779_v36 = vpop.permute.xlu0 %1122  ;;  %v3781_v47 = vpop.permute.xlu1 %251  ;;  %v1299_v32 = vsel %vm4632_vm14, %v1109_v51, %v1298_v49 }
 0x194   : > { %v1193_v3 = vrot.slane %v3779_v36, 4  ;;  %v260_v16 = vrot.slane %v3781_v47, 4  ;;  %v1472_v30 = vcombine.high %v1288_v23, %v1299_v32  ;;  %v1471_v21 = vcombine.low %v1288_v23, %v1299_v32  ;;  %v2603_v23 = vld [vmem:[%s2688_s24 + $0x10] sm:$0xff] }
 0x195   : > { %1128 = vrot.lane.b32.xlu0 %v998_v9, %s2637_s23  ;;  %346 = vrot.lane.b32.xlu1 %v3731_v52, %s2627_s12 }
 0x196   : > { %v1309_v43 = vsel %vm263_vm0, %v1192_v0, %v1193_v3  ;;  %v269_v60 = vsel %vm263_vm0, %v4708_v14, %v260_v16  ;;  %v4711_v0 = vrot.slane %v3185_v15, 4  ;;  %v4712_v14 = vrot.slane %v3187_v29, 4 }
 0x197   : > { %v1310_v51 = vsel %vm4632_vm14, %v1121_v25, %v1309_v43  ;;  %v3797_v7 = vpop.permute.xlu0 %282  ;;  %v3799_v18 = vpop.permute.xlu1 %312  ;;  %v270_v2 = vsel %vm265_vm2, %v3160_v61, %v269_v60 }
 0x198   : > { %v291_v49 = vrot.slane %v3797_v7, 4  ;;  %v321_v9 = vrot.slane %v3799_v18, 4  ;;  %v1483_v39 = vcombine.high %v1310_v51, %v1310_v51  ;;  %v2406_v57 = vpack.c.bf16 %v1310_v51, %v1471_v21 }
 0x199   : > { %376 = vrot.lane.b32.xlu0 %v3731_v52, %s2628_s13  ;;  %406 = vrot.lane.b32.xlu1 %v3731_v52, %s2629_s14  ;;  %v1332_v41 = vcombine.high %v2603_v23, %v270_v2 }
 0x19a   : > { %v299_v43 = vsel %vm263_vm0, %v4711_v0, %v291_v49  ;;  %v329_v61 = vsel %vm263_vm0, %v4712_v14, %v321_v9  ;;  %v2403_v60 = vpack.c.bf16 %v1483_v39, %v1472_v30 }
 0x19b   : > { %v3820_v4 = vpop.permute.xlu0 %1100  ;;  %v3822_v6 = vpop.permute.xlu1 %1112  ;;  %v300_v38 = vsel %vm4635_vm9, %v3185_v15, %v299_v43  ;;  %v330_v32 = vsel %vm4713_vm13, %v3187_v29, %v329_v61  ;;  %v1331_v15 = vcombine.low %v2603_v23, %v270_v2  ;;  %v3852_v2 = vld [vmem:[%s4547_s1] sm:$0xff]  ;;  %vm1645_vm13 = vcmask 883712   ;;  %v2604_v61 = vld [vmem:[%s2688_s24 + $0x2c] sm:$0xff] }
 0x19c   : > { %v1182_v0 = vrot.slane %v3820_v4, 4  ;;  %v4636_v40 = vrot.slane %v3822_v6, 4  ;;  %2405 = vmatprep.subr.msk.bf16.mxu0 %vm3810_vm15, %v2403_v60  ;;  %v1343_v39 = vcombine.low %v300_v38, %v330_v32  ;;  %v1344_v30 = vcombine.high %v300_v38, %v330_v32 }
 0x19d   : > { %436 = vrot.lane.b32.xlu0 %v3731_v52, %s2630_s15  ;;  %466 = vrot.lane.b32.xlu1 %v3731_v52, %s2631_s16 }
 0x19e   : > { %v1289_v29 = vsel %vm263_vm0, %v1181_v34, %v1182_v0  ;;  %v1300_v51 = vsel %vm263_vm0, %v1187_v35, %v4636_v40  ;;  %2408 = vmatpush1.bf16.msk.msra.mxu0 %vm3810_vm15, %v2406_v57  ;;  %v2439_v38 = vpack.c.bf16 %v1344_v30, %v1332_v41  ;;  %v2441_v14 = vpack.c.bf16 %v1343_v39, %v1331_v15 }
 0x19f   : > { %v3845_v21 = vpop.permute.xlu0 %1124  ;;  %v3847_v43 = vpop.permute.xlu1 %253  ;;  %v1290_v34 = vsel %vm4632_vm14, %v3746_v56, %v1289_v29  ;;  %v1301_v35 = vsel %vm4632_vm14, %v3763_v48, %v1300_v51  ;;  %v4714_v30 = vmov 0.0   ;;  %v749_v51 = vrot.slane %v3378_v13, 4 }
 0x1a0   : > { %v4631_v57 = vrot.slane %v3845_v21, 4  ;;  %v4630_v41 = vrot.slane %v3847_v43, 4  ;;  %2440 = vmatprep.subr.bf16.mxu0 %v2439_v38  ;;  %v1474_v39 = vcombine.high %v1290_v34, %v1301_v35 }
 0x1a1   : > { %502 = vrot.lane.b32.xlu0 %v2604_v61, %s2623_s8  ;;  %532 = vrot.lane.b32.xlu1 %v2604_v61, %s2624_s9 }
 0x1a2   : > { %v1311_v60 = vsel %vm263_vm0, %v1193_v3, %v4631_v57  ;;  %v271_v56 = vsel %vm263_vm0, %v260_v16, %v4630_v41  ;;  %2361 = vmatmul.mubr.msk.f32.vlgmr.msra.gmra.mrb[0].mxu0 %vm1645_vm13, %v3852_v2 }
 0x1a3   : > { %v1312_v48 = vsel %vm4632_vm14, %v3779_v36, %v1311_v60  ;;  %2442 = vmatpush1.bf16.msra.mxu0 %v2441_v14  ;;  %v3873_v32 = vpop.permute.xlu0 %284  ;;  %v3875_v23 = vpop.permute.xlu1 %314  ;;  %1879 = vmatprep.mubr.f32.mxu0 %v4714_v30  ;;  %v272_v16 = vsel %vm265_vm2, %v3781_v47, %v271_v56  ;;  %v1473_v36 = vcombine.low %v1290_v34, %v1301_v35  ;;  %vm4715_vm14 = vcmask 949248  }
 0x1a4   : > { %v4633_v3 = vrot.slane %v3873_v32, 4  ;;  %v4634_v15 = vrot.slane %v3875_v23, 4  ;;  %v1484_v29 = vcombine.high %v1312_v48, %v1312_v48  ;;  %v1334_v35 = vcombine.high %v3436_v19, %v272_v16 }
 0x1a5   : > { %562 = vrot.lane.b32.xlu0 %v2604_v61, %s2632_s17  ;;  %592 = vrot.lane.b32.xlu1 %v2604_v61, %s2633_s18  ;;  %v2436_v47 = vpack.c.bf16 %v1312_v48, %v1473_v36  ;;  %v809_v36 = vrot.slane %v3460_v63, 4 }
 0x1a6   : > { %v301_v38 = vsel %vm263_vm0, %v291_v49, %v4633_v3  ;;  %v331_v14 = vsel %vm263_vm0, %v321_v9, %v4634_v15  ;;  %v2433_v60 = vpack.c.bf16 %v1484_v29, %v1474_v39  ;;  %v779_v29 = vrot.slane %v3380_v59, 4 }
 0x1a7   : > { %v3891_v41 = vpop.permute.xlu0 %342  ;;  %v3893_v57 = vpop.permute.xlu1 %372  ;;  %v302_v56 = vsel %vm4635_vm9, %v3797_v7, %v301_v38  ;;  %v332_v34 = vsel %vm4715_vm14, %v3799_v18, %v331_v14  ;;  %v1333_v7 = vcombine.low %v3436_v19, %v272_v16  ;;  %v4716_v18 = vrot.slane %v2990_v54, 4 }
 0x1a8   : > { %v351_v49 = vrot.slane %v3891_v41, 4  ;;  %v381_v3 = vrot.slane %v3893_v57, 4  ;;  %2435 = vmatprep.subr.msk.bf16.mxu1 %vm3810_vm15, %v2433_v60  ;;  %v1345_v9 = vcombine.low %v302_v56, %v332_v34  ;;  %v1346_v39 = vcombine.high %v302_v56, %v332_v34 }
 0x1a9   : > { %622 = vrot.lane.b32.xlu0 %v2604_v61, %s2634_s19  ;;  %652 = vrot.lane.b32.xlu1 %v2604_v61, %s2635_s4  ;;  %v760_v48 = vsel %vm263_vm0, %v4716_v18, %v749_v51  ;;  %v4717_v38 = vrot.slane %v3290_v10, 4  ;;  %v4718_v60 = vrot.slane %v3292_v11, 4  ;;  %vm4719_vm14 = vcmask 941056  }
 0x1aa   : > { %2438 = vmatpush1.bf16.msk.msra.mxu1 %vm3810_vm15, %v2436_v47  ;;  %v2469_v34 = vpack.c.bf16 %v1346_v39, %v1334_v35  ;;  %v2471_v16 = vpack.c.bf16 %v1345_v9, %v1333_v7  ;;  %vm4720_vm9 = vcmask 932864   ;;  %v761_v35 = vsel %vm750_vm4, %v760_v48, %v3378_v13 }
 0x1ab   : > { %v359_v14 = vsel %vm263_vm0, %v4717_v38, %v351_v49  ;;  %v389_v56 = vsel %vm263_vm0, %v4718_v60, %v381_v3  ;;  %v403_v15 = vpop.permute.xlu0 %402  ;;  %v433_v19 = vpop.permute.xlu1 %432  ;;  %v4721_v38 = vrot.slane %v2988_v53, 4  ;;  %v4724_v7 = vrot.slane %v3309_v26, 4 }
 0x1ac   : > { %v360_v54 = vsel %vm4719_vm14, %v3290_v10, %v359_v14  ;;  %v390_v51 = vsel %vm4720_vm9, %v3292_v11, %v389_v56  ;;  %v411_v18 = vrot.slane %v403_v15, 4  ;;  %v441_v40 = vrot.slane %v433_v19, 4  ;;  %2470 = vmatprep.subr.bf16.mxu1 %v2469_v34 }
 0x1ad   : > { %682 = vrot.lane.b32.xlu0 %v2604_v61, %s2636_s22  ;;  %1010 = vrot.lane.b32.xlu1 %v2604_v61, %s2637_s23  ;;  %v730_v47 = vsel %vm265_vm2, %v2988_v53, %v4721_v38  ;;  %v4722_v10 = vrot.slane %v2996_v55, 4  ;;  %v4723_v11 = vrot.slane %v3307_v5, 4  ;;  %v1355_v14 = vcombine.low %v360_v54, %v390_v51 }
 0x1ae   : > { %v449_v61 = vsel %vm263_vm0, %v4724_v7, %v441_v40  ;;  %2364 = vmatmul.mubr.msk.f32.vlgmr.msra.gmra.mrb[0].mxu1 %vm1645_vm13, %v3852_v2  ;;  %v4725_v53 = vrot.slane %v4684_v45, 4  ;;  %vm4726_vm4 = vcmask 850944   ;;  %vm4727_vm9 = vcmask 842752  }
 0x1af   : > { %v790_v9 = vsel %vm263_vm0, %v4722_v10, %v779_v29  ;;  %v419_v39 = vsel %vm263_vm0, %v4723_v11, %v411_v18  ;;  %2472 = vmatpush1.bf16.msra.mxu1 %v2471_v16  ;;  %v3946_v55 = vpop.permute.xlu0 %344  ;;  %v3948_v29 = vpop.permute.xlu1 %374  ;;  %v450_v60 = vsel %vm4727_vm9, %v3309_v26, %v449_v61  ;;  %v1356_v56 = vcombine.high %v360_v54, %v390_v51 }
 0x1b0   : > { %v820_v13 = vsel %vm263_vm0, %v4725_v53, %v809_v36  ;;  %v420_v48 = vsel %vm4726_vm4, %v3307_v5, %v419_v39  ;;  %1950 = vmatprep.mubr.f32.mxu1 %v4714_v30  ;;  %v352_v34 = vrot.slane %v3946_v55, 4  ;;  %v382_v45 = vrot.slane %v3948_v29, 4 }
 0x1b1   : > { %v1367_v38 = vcombine.low %v420_v48, %v450_v60  ;;  %v1368_v36 = vcombine.high %v420_v48, %v450_v60  ;;  %1022 = vrot.lane.b32.xlu0 %v730_v47, %s2637_s23  ;;  %1034 = vrot.lane.b32.xlu1 %v761_v35, %s2637_s23  ;;  %v791_v11 = vsel %vm780_vm5, %v790_v9, %v3380_v59  ;;  %vm4728_vm4 = vcmask 932864  }
 0x1b2   : > { %v361_v5 = vsel %vm263_vm0, %v351_v49, %v352_v34  ;;  %v391_v26 = vsel %vm263_vm0, %v381_v3, %v382_v45  ;;  %v821_v47 = vsel %vm810_vm7, %v820_v13, %v3460_v63  ;;  %v4729_v9 = vrot.slane %v4685_v20, 4  ;;  %vm4732_vm7 = vmmov %vm4727_vm9 }
 0x1b3   : > { %v2443_v16 = vpack.c.bf16 %v1368_v36, %v1356_v56  ;;  %v2445_v54 = vpack.c.bf16 %v1367_v38, %v1355_v14  ;;  %v3965_v51 = vpop.permute.xlu0 %404  ;;  %v3967_v10 = vpop.permute.xlu1 %434  ;;  %v362_v3 = vsel %vm4719_vm14, %v3891_v41, %v361_v5  ;;  %v392_v39 = vsel %vm4728_vm4, %v3893_v57, %v391_v26 }
 0x1b4   : > { %v412_v35 = vrot.slane %v3965_v51, 4  ;;  %v442_v49 = vrot.slane %v3967_v10, 4  ;;  %v851_v41 = vsel %vm841_vm8, %v4685_v20, %v4729_v9  ;;  %v4730_v57 = vrot.slane %v4686_v1, 4 }
 0x1b5   : > { %2444 = vmatprep.subr.bf16.mxu0 %v2443_v16  ;;  %1046 = vrot.lane.b32.xlu0 %v791_v11, %s2637_s23  ;;  %vm4731_vm5 = vcmask 850944   ;;  %v1357_v13 = vcombine.low %v362_v3, %v392_v39  ;;  %v1358_v48 = vcombine.high %v362_v3, %v392_v39  ;;  %v4733_v20 = vrot.slane %v3389_v27, 4 }
 0x1b6   : > { %1058 = vrot.lane.b32.xlu1 %v821_v47, %s2637_s23  ;;  %v421_v59 = vsel %vm263_vm0, %v411_v18, %v412_v35  ;;  %v451_v63 = vsel %vm263_vm0, %v441_v40, %v442_v49  ;;  %2446 = vmatpush1.bf16.msra.mxu0 %v2445_v54  ;;  %v881_v7 = vsel %vm871_vm1, %v4686_v1, %v4730_v57  ;;  %v4734_v36 = vrot.slane %v3391_v31, 4 }
 0x1b7   : > { %v463_v61 = vpop.permute.xlu0 %462  ;;  %v499_v14 = vpop.permute.xlu1 %498  ;;  %v422_v53 = vsel %vm4731_vm5, %v403_v15, %v421_v59  ;;  %v452_v18 = vsel %vm4732_vm7, %v433_v19, %v451_v63  ;;  %v4735_v54 = vrot.slane %v4687_v24, 4  ;;  %v4736_v47 = vrot.slane %v4701_v28, 4 }
 0x1b8   : > { %v471_v40 = vrot.slane %v463_v61, 4  ;;  %v507_v60 = vrot.slane %v499_v14, 4  ;;  %v1369_v56 = vcombine.low %v422_v53, %v452_v18  ;;  %v1370_v38 = vcombine.high %v422_v53, %v452_v18 }
 0x1b9   : > { %1070 = vrot.lane.b32.xlu0 %v851_v41, %s2637_s23  ;;  %v911_v11 = vsel %vm901_vm3, %v4687_v24, %v4735_v54  ;;  %v941_v3 = vsel %vm931_vm6, %v4701_v28, %v4736_v47  ;;  %vm4737_vm1 = vcmask 834560   ;;  %v4738_v24 = vrot.slane %v3405_v46, 4 }
 0x1ba   : > { %1082 = vrot.lane.b32.xlu1 %v881_v7, %s2637_s23  ;;  %v479_v1 = vsel %vm263_vm0, %v4733_v20, %v471_v40  ;;  %v515_v15 = vsel %vm263_vm0, %v4734_v36, %v507_v60  ;;  %v2473_v5 = vpack.c.bf16 %v1370_v38, %v1358_v48  ;;  %v2475_v19 = vpack.c.bf16 %v1369_v56, %v1357_v13  ;;  %vm4743_vm6 = vmmov %vm4737_vm1 }
 0x1bb   : > { %v529_v26 = vpop.permute.xlu0 %528  ;;  %v559_v16 = vpop.permute.xlu1 %558  ;;  %v480_v63 = vsel %vm4737_vm1, %v3389_v27, %v479_v1  ;;  %v516_v9 = vsel %vm511_vm11, %v3391_v31, %v515_v15  ;;  %v4739_v57 = vrot.slane %v3407_v58, 4  ;;  %v4740_v7 = vrot.slane %v4703_v12, 4 }
 0x1bc   : > { %v537_v39 = vrot.slane %v529_v26, 4  ;;  %v567_v59 = vrot.slane %v559_v16, 4  ;;  %2474 = vmatprep.subr.bf16.mxu1 %v2473_v5  ;;  %v4741_v31 = vrot.slane %v4706_v50, 4  ;;  %vm4742_vm3 = vcmask 900096  }
 0x1bd   : > { %1094 = vrot.lane.b32.xlu0 %v911_v11, %s2637_s23  ;;  %2476 = vmatpush1.bf16.msra.mxu1 %v2475_v19  ;;  %v970_v27 = vsel %vm511_vm11, %v4703_v12, %v4740_v7  ;;  %v1379_v38 = vcombine.low %v480_v63, %v516_v9  ;;  %v1380_v20 = vcombine.high %v480_v63, %v516_v9  ;;  %v1321_v19 = vld [vmem:[%s4548_s2] sm:$0xff]  ;;  %vm4744_vm8 = vmmov %vm4742_vm3  ;;  %vm4747_vm9 = vcmask 809984  }
 0x1be   : > { %1106 = vrot.lane.b32.xlu1 %v941_v3, %s2637_s23  ;;  %v545_v41 = vsel %vm263_vm0, %v4738_v24, %v537_v39  ;;  %v575_v28 = vsel %vm263_vm0, %v4739_v57, %v567_v59  ;;  %v999_v53 = vsel %vm541_vm12, %v4706_v50, %v4741_v31  ;;  %vm4750_vm14 = vcmask 801792   ;;  %vm4752_vm5 = vmmov %vm4747_vm9 }
 0x1bf   : > { %v4033_v18 = vpop.permute.xlu0 %464  ;;  %v4035_v13 = vpop.permute.xlu1 %500  ;;  %v546_v48 = vsel %vm541_vm12, %v3405_v46, %v545_v41  ;;  %v576_v56 = vsel %vm4742_vm3, %v3407_v58, %v575_v28  ;;  %vm4751_vm4 = vcmask 719872   ;;  %vm4753_vm7 = vmmov %vm4750_vm14  ;;  %vm4757_vm3 = vcmask 711680  }
 0x1c0   : > { %v472_v1 = vrot.slane %v4033_v18, 4  ;;  %v508_v12 = vrot.slane %v4035_v13, 4  ;;  %v1391_v36 = vcombine.low %v546_v48, %v576_v56  ;;  %v1392_v15 = vcombine.high %v546_v48, %v576_v56  ;;  %vm4754_vm1 = vmmov %vm4751_vm4 }
 0x1c1   : > { %1118 = vrot.lane.b32.xlu0 %v970_v27, %s2637_s23  ;;  %v4745_v56 = vrot.slane %v3462_v33, 4 }
 0x1c2   : > { %1130 = vrot.lane.b32.xlu1 %v999_v53, %s2637_s23  ;;  %v481_v50 = vsel %vm263_vm0, %v471_v40, %v472_v1  ;;  %v517_v46 = vsel %vm263_vm0, %v507_v60, %v508_v12  ;;  %v2447_v58 = vpack.c.bf16 %v1392_v15, %v1380_v20  ;;  %v2449_v5 = vpack.c.bf16 %v1391_v36, %v1379_v38 }
 0x1c3   : > { %v4054_v54 = vpop.permute.xlu0 %530  ;;  %v4056_v11 = vpop.permute.xlu1 %560  ;;  %v482_v40 = vsel %vm4743_vm6, %v463_v61, %v481_v50  ;;  %v518_v63 = vsel %vm511_vm11, %v499_v14, %v517_v46  ;;  %v2640_v60 = vmov 0   ;;  %v4746_v38 = vrot.slane %v3474_v17, 4  ;;  %vm4758_vm6 = vmmov %vm4757_vm3 }
 0x1c4   : > { %v4650_v47 = vrot.slane %v4054_v54, 4  ;;  %v4649_v3 = vrot.slane %v4056_v11, 4  ;;  %2448 = vmatprep.subr.bf16.mxu0 %v2447_v58  ;;  %2595 = vset.pattern.permute.xlu0 %v2640_v60  ;;  %v1381_v7 = vcombine.low %v482_v40, %v518_v63  ;;  %v1382_v14 = vcombine.high %v482_v40, %v518_v63 }
 0x1c5   : > { %2450 = vmatpush1.bf16.msra.mxu0 %v2449_v5  ;;  %1324 = vperm.xlu0 %2595, %v1321_v19   ;;  %v4748_v5 = vrot.slane %v3476_v44, 4  ;;  %v4749_v40 = vrot.slane %v3488_v42, 4 }
 0x1c6   : > { %v547_v9 = vsel %vm263_vm0, %v537_v39, %v4650_v47  ;;  %v577_v24 = vsel %vm263_vm0, %v567_v59, %v4649_v3 }
 0x1c7   : > { %v589_v41 = vpop.permute.xlu0 %588  ;;  %v619_v57 = vpop.permute.xlu1 %618  ;;  %v548_v28 = vsel %vm541_vm12, %v529_v26, %v547_v9  ;;  %v578_v61 = vsel %vm4744_vm8, %v559_v16, %v577_v24  ;;  %vm4761_vm8 = vmmov %vm4757_vm3 }
 0x1c8   : > { %v597_v27 = vrot.slane %v589_v41, 4  ;;  %v627_v31 = vrot.slane %v619_v57, 4  ;;  %v1393_v53 = vcombine.low %v548_v28, %v578_v61  ;;  %v1394_v48 = vcombine.high %v548_v28, %v578_v61 }
 0x1ca   : > { %v605_v39 = vsel %vm263_vm0, %v4745_v56, %v597_v27  ;;  %v635_v59 = vsel %vm263_vm0, %v4746_v38, %v627_v31  ;;  %v2477_v20 = vpack.c.bf16 %v1394_v48, %v1382_v14  ;;  %v2479_v36 = vpack.c.bf16 %v1393_v53, %v1381_v7 }
 0x1cb   : > { %v649_v15 = vpop.permute.xlu0 %648  ;;  %v679_v26 = vpop.permute.xlu1 %678  ;;  %v606_v46 = vsel %vm601_vm10, %v3462_v33, %v605_v39  ;;  %v636_v58 = vsel %vm4747_vm9, %v3474_v17, %v635_v59  ;;  %vm4762_vm9 = vmmov %vm4757_vm3 }
 0x1cc   : > { %v657_v50 = vrot.slane %v649_v15, 4  ;;  %v687_v16 = vrot.slane %v679_v26, 4  ;;  %2478 = vmatprep.subr.bf16.mxu1 %v2477_v20  ;;  %v1403_v17 = vcombine.low %v606_v46, %v636_v58  ;;  %v1404_v28 = vcombine.high %v606_v46, %v636_v58 }
 0x1cd   : > { %2480 = vmatpush1.bf16.msra.mxu1 %v2479_v36 }
 0x1ce   : > { %v665_v19 = vsel %vm263_vm0, %v4748_v5, %v657_v50  ;;  %v695_v63 = vsel %vm263_vm0, %v4749_v40, %v687_v16 }
 0x1cf   : > { %v4086_v60 = vpop.permute.xlu0 %590  ;;  %v4088_v9 = vpop.permute.xlu1 %620  ;;  %v666_v24 = vsel %vm4750_vm14, %v3476_v44, %v665_v19  ;;  %v696_v33 = vsel %vm4751_vm4, %v3488_v42, %v695_v63  ;;  %vm4763_vm14 = vmmov %vm4757_vm3 }
 0x1d0   : > { %v4648_v61 = vrot.slane %v4086_v60, 4  ;;  %v4647_v7 = vrot.slane %v4088_v9, 4  ;;  %v1415_v14 = vcombine.low %v666_v24, %v696_v33  ;;  %v1416_v53 = vcombine.high %v666_v24, %v696_v33  ;;  %vm4764_vm4 = vmmov %vm4757_vm3 }
 0x1d2   : > { %v607_v48 = vsel %vm263_vm0, %v597_v27, %v4648_v61  ;;  %v637_v56 = vsel %vm263_vm0, %v627_v31, %v4647_v7  ;;  %v2451_v44 = vpack.c.bf16 %v1416_v53, %v1404_v28  ;;  %v2453_v39 = vpack.c.bf16 %v1415_v14, %v1403_v17 }
 0x1d3   : > { %v4102_v38 = vpop.permute.xlu0 %650  ;;  %v4104_v42 = vpop.permute.xlu1 %680  ;;  %v608_v36 = vsel %vm601_vm10, %v589_v41, %v607_v48  ;;  %v638_v46 = vsel %vm4752_vm5, %v619_v57, %v637_v56  ;;  %v4755_v28 = vrot.slane %v3554_v62, 4  ;;  %v4756_v14 = vrot.slane %v3576_v8, 4  ;;  %vm4765_vm5 = vmmov %vm4757_vm3 }
 0x1d4   : > { %v4642_v59 = vrot.slane %v4102_v38, 4  ;;  %v4641_v20 = vrot.slane %v4104_v42, 4  ;;  %2452 = vmatprep.subr.bf16.mxu0 %v2451_v44  ;;  %v1405_v63 = vcombine.low %v608_v36, %v638_v46  ;;  %v1406_v24 = vcombine.high %v608_v36, %v638_v46 }
 0x1d5   : > { %2454 = vmatpush1.bf16.msra.mxu0 %v2453_v39  ;;  %v4759_v46 = vrot.slane %v3578_v37, 4 }
 0x1d6   : > { %v667_v27 = vsel %vm263_vm0, %v657_v50, %v4642_v59  ;;  %v697_v31 = vsel %vm263_vm0, %v687_v16, %v4641_v20 }
 0x1d7   : > { %v1007_v58 = vpop.permute.xlu0 %1006  ;;  %v1019_v5 = vpop.permute.xlu1 %1018  ;;  %v668_v19 = vsel %vm4753_vm7, %v649_v15, %v667_v27  ;;  %v698_v40 = vsel %vm4754_vm1, %v679_v26, %v697_v31  ;;  %v4760_v31 = vrot.slane %v3593_v22, 4  ;;  %vm4766_vm7 = vmmov %vm4757_vm3 }
 0x1d8   : > { %v1135_v41 = vrot.slane %v1007_v58, 4  ;;  %v1141_v33 = vrot.slane %v1019_v5, 4  ;;  %v1417_v57 = vcombine.low %v668_v19, %v698_v40  ;;  %v1418_v17 = vcombine.high %v668_v19, %v698_v40  ;;  %vm4771_vm1 = vmmov %vm4757_vm3 }
 0x1da   : > { %v1203_v50 = vsel %vm263_vm0, %v4755_v28, %v1135_v41  ;;  %v1214_v16 = vsel %vm263_vm0, %v4756_v14, %v1141_v33  ;;  %v2481_v53 = vpack.c.bf16 %v1418_v17, %v1406_v24  ;;  %v2483_v48 = vpack.c.bf16 %v1417_v57, %v1405_v63 }
 0x1db   : > { %v1031_v56 = vpop.permute.xlu0 %1030  ;;  %v1043_v15 = vpop.permute.xlu1 %1042  ;;  %v1204_v39 = vsel %vm4757_vm3, %v3554_v62, %v1203_v50  ;;  %v1215_v36 = vsel %vm4758_vm6, %v3576_v8, %v1214_v16  ;;  %vm4772_vm3 = vmmov %vm4771_vm1 }
 0x1dc   : > { %v1147_v44 = vrot.slane %v1031_v56, 4  ;;  %v1153_v26 = vrot.slane %v1043_v15, 4  ;;  %2482 = vmatprep.subr.bf16.mxu1 %v2481_v53  ;;  %v1427_v8 = vcombine.low %v1204_v39, %v1215_v36  ;;  %v1428_v57 = vcombine.high %v1204_v39, %v1215_v36  ;;  %vm4777_vm6 = vmmov %vm4771_vm1 }
 0x1dd   : > { %2484 = vmatpush1.bf16.msra.mxu1 %v2483_v48 }
 0x1de   : > { %v1225_v27 = vsel %vm263_vm0, %v4759_v46, %v1147_v44  ;;  %v1236_v19 = vsel %vm263_vm0, %v4760_v31, %v1153_v26 }
 0x1df   : > { %v4134_v40 = vpop.permute.xlu0 %1008  ;;  %v4136_v63 = vpop.permute.xlu1 %1020  ;;  %v1226_v24 = vsel %vm4761_vm8, %v3578_v37, %v1225_v27  ;;  %v1237_v62 = vsel %vm4762_vm9, %v3593_v22, %v1236_v19  ;;  %vm4778_vm8 = vmmov %vm4771_vm1 }
 0x1e0   : > { %v4640_v17 = vrot.slane %v4134_v40, 4  ;;  %v4639_v28 = vrot.slane %v4136_v63, 4  ;;  %v1439_v50 = vcombine.low %v1226_v24, %v1237_v62  ;;  %v1440_v14 = vcombine.high %v1226_v24, %v1237_v62  ;;  %vm4779_vm9 = vmmov %vm4771_vm1 }
 0x1e2   : > { %v1205_v16 = vsel %vm263_vm0, %v1135_v41, %v4640_v17  ;;  %v1216_v53 = vsel %vm263_vm0, %v1141_v33, %v4639_v28  ;;  %v2455_v37 = vpack.c.bf16 %v1440_v14, %v1428_v57  ;;  %v2457_v48 = vpack.c.bf16 %v1439_v50, %v1427_v8 }
 0x1e3   : > { %v4150_v46 = vpop.permute.xlu0 %1032  ;;  %v4152_v22 = vpop.permute.xlu1 %1044  ;;  %v1206_v27 = vsel %vm4763_vm14, %v1007_v58, %v1205_v16  ;;  %v1217_v31 = vsel %vm4764_vm4, %v1019_v5, %v1216_v53  ;;  %v4767_v53 = vld [vmem:[#allocation3_spill] sm:$0xff]  ;;  %vm4780_vm14 = vmmov %vm4771_vm1 }
 0x1e4   : > { %v4637_v39 = vrot.slane %v4150_v46, 4  ;;  %v4638_v36 = vrot.slane %v4152_v22, 4  ;;  %2456 = vmatprep.subr.bf16.mxu0 %v2455_v37  ;;  %v1429_v57 = vcombine.low %v1206_v27, %v1217_v31  ;;  %v1430_v50 = vcombine.high %v1206_v27, %v1217_v31  ;;  %vm4781_vm4 = vmmov %vm4771_vm1 }
 0x1e5   : > { %2458 = vmatpush1.bf16.msra.mxu0 %v2457_v48  ;;  %v4768_v37 = vrot.slane %v4767_v53, 4  ;;  %v4769_v48 = vld [vmem:[#allocation6_spill] sm:$0xff] }
 0x1e6   : > { %v1227_v41 = vsel %vm263_vm0, %v1147_v44, %v4637_v39  ;;  %v1238_v33 = vsel %vm263_vm0, %v1153_v26, %v4638_v36  ;;  %v4770_v39 = vrot.slane %v4769_v48, 4 }
 0x1e7   : > { %v1055_v19 = vpop.permute.xlu0 %1054  ;;  %v1067_v24 = vpop.permute.xlu1 %1066  ;;  %v1228_v62 = vsel %vm4765_vm5, %v1031_v56, %v1227_v41  ;;  %v1239_v8 = vsel %vm4766_vm7, %v1043_v15, %v1238_v33  ;;  %v4773_v33 = vld [vmem:[#allocation8_spill] sm:$0xff]  ;;  %vm4782_vm5 = vmmov %vm4771_vm1 }
 0x1e8   : > { %v1159_v58 = vrot.slane %v1055_v19, 4  ;;  %v1165_v14 = vrot.slane %v1067_v24, 4  ;;  %v1441_v5 = vcombine.low %v1228_v62, %v1239_v8  ;;  %v1442_v16 = vcombine.high %v1228_v62, %v1239_v8  ;;  %vm4784_vm7 = vmmov %vm4771_vm1 }
 0x1e9   : > { %v4774_v62 = vrot.slane %v4773_v33, 4 }
 0x1ea   : > { %v1247_v44 = vsel %vm263_vm0, %v4768_v37, %v1159_v58  ;;  %v1258_v26 = vsel %vm263_vm0, %v4770_v39, %v1165_v14  ;;  %v2485_v36 = vpack.c.bf16 %v1442_v16, %v1430_v50  ;;  %v2487_v28 = vpack.c.bf16 %v1441_v5, %v1429_v57  ;;  %v4775_v37 = vld [vmem:[#allocation9_spill] sm:$0xff] }
 0x1eb   : > { %v1079_v17 = vpop.permute.xlu0 %1078  ;;  %v1091_v56 = vpop.permute.xlu1 %1090  ;;  %v1248_v27 = vsel %vm4771_vm1, %v4767_v53, %v1247_v44  ;;  %v1259_v31 = vsel %vm4772_vm3, %v4769_v48, %v1258_v26  ;;  %v4776_v39 = vrot.slane %v4775_v37, 4  ;;  %vm4786_vm3 = vmmov %vm4771_vm1 }
 0x1ec   : > { %v1171_v41 = vrot.slane %v1079_v17, 4  ;;  %v1177_v15 = vrot.slane %v1091_v56, 4  ;;  %2486 = vmatprep.subr.bf16.mxu1 %v2485_v36  ;;  %v1451_v53 = vcombine.low %v1248_v27, %v1259_v31 }
 0x1ed   : > { %2488 = vmatpush1.bf16.msra.mxu1 %v2487_v28  ;;  %v1452_v28 = vcombine.high %v1248_v27, %v1259_v31 }
 0x1ee   : > { %v1269_v8 = vsel %vm263_vm0, %v4774_v62, %v1171_v41  ;;  %v1280_v57 = vsel %vm263_vm0, %v4776_v39, %v1177_v15 }
 0x1ef   : > { %v4182_v50 = vpop.permute.xlu0 %1056  ;;  %v4184_v5 = vpop.permute.xlu1 %1068  ;;  %v1270_v36 = vsel %vm4777_vm6, %v4773_v33, %v1269_v8  ;;  %v1281_v16 = vsel %vm4778_vm8, %v4775_v37, %v1280_v57  ;;  %vm4790_vm6 = vcmask 1031168   ;;  %vm4791_vm8 = vcmask 949248  }
 0x1f0   : > { %v4646_v44 = vrot.slane %v4182_v50, 4  ;;  %v4645_v48 = vrot.slane %v4184_v5, 4  ;;  %v1463_v26 = vcombine.low %v1270_v36, %v1281_v16  ;;  %v1464_v62 = vcombine.high %v1270_v36, %v1281_v16 }
 0x1f2   : > { %v1249_v39 = vsel %vm263_vm0, %v1159_v58, %v4646_v44  ;;  %v1260_v20 = vsel %vm263_vm0, %v1165_v14, %v4645_v48  ;;  %v2459_v33 = vpack.c.bf16 %v1464_v62, %v1452_v28  ;;  %v2461_v8 = vpack.c.bf16 %v1463_v26, %v1451_v53 }
 0x1f3   : > { %v4198_v59 = vpop.permute.xlu0 %1080  ;;  %v4200_v37 = vpop.permute.xlu1 %1092  ;;  %v1250_v57 = vsel %vm4779_vm9, %v1055_v19, %v1249_v39  ;;  %v1261_v36 = vsel %vm4780_vm14, %v1067_v24, %v1260_v20  ;;  %vm4792_vm9 = vmmov %vm4790_vm6 }
 0x1f4   : > { %v4644_v27 = vrot.slane %v4198_v59, 4  ;;  %v4643_v31 = vrot.slane %v4200_v37, 4  ;;  %2460 = vmatprep.subr.bf16.mxu0 %v2459_v33  ;;  %v1453_v19 = vcombine.low %v1250_v57, %v1261_v36  ;;  %v1454_v62 = vcombine.high %v1250_v57, %v1261_v36  ;;  %vm4793_vm14 = vmmov %vm4791_vm8 }
 0x1f5   : > { %2462 = vmatpush1.bf16.msra.mxu0 %v2461_v8 }
 0x1f6   : > { %v1271_v58 = vsel %vm263_vm0, %v1171_v41, %v4644_v27  ;;  %v1282_v14 = vsel %vm263_vm0, %v1177_v15, %v4643_v31  ;;  %v4783_v31 = vrot.slane %v3822_v6, 4 }
 0x1f7   : > { %v4212_v16 = vpop.permute.xlu0 %1102  ;;  %v4214_v53 = vpop.permute.xlu1 %1114  ;;  %v1272_v28 = vsel %vm4781_vm4, %v1079_v17, %v1271_v58  ;;  %v1283_v26 = vsel %vm4782_vm5, %v1091_v56, %v1282_v14  ;;  %vm4794_vm4 = vmmov %vm4771_vm1 }
 0x1f8   : > { %v1183_v20 = vrot.slane %v4212_v16, 4  ;;  %v1189_v24 = vrot.slane %v4214_v53, 4  ;;  %v1465_v39 = vcombine.low %v1272_v28, %v1283_v26  ;;  %v1466_v41 = vcombine.high %v1272_v28, %v1283_v26  ;;  %vm4795_vm5 = vmmov %vm4771_vm1 }
 0x1f9   : > { %v4785_v26 = vrot.slane %v3845_v21, 4 }
 0x1fa   : > { %v2489_v33 = vpack.c.bf16 %v1466_v41, %v1454_v62  ;;  %v2491_v8 = vpack.c.bf16 %v1465_v39, %v1453_v19  ;;  %v1291_v15 = vsel %vm263_vm0, %v1182_v0, %v1183_v20  ;;  %v1302_v17 = vsel %vm263_vm0, %v4783_v31, %v1189_v24 }
 0x1fb   : > { %v1127_v58 = vpop.permute.xlu0 %1126  ;;  %v256_v56 = vpop.permute.xlu1 %255  ;;  %v1292_v36 = vsel %vm4784_vm7, %v3820_v4, %v1291_v15  ;;  %v1303_v28 = vsel %vm4771_vm1, %v3822_v6, %v1302_v17  ;;  %v4787_v31 = vrot.slane %v3847_v43, 4  ;;  %v4788_v6 = vrot.slane %v3873_v32, 4 }
 0x1fc   : > { %v1195_v14 = vrot.slane %v1127_v58, 4  ;;  %v262_v57 = vrot.slane %v256_v56, 4  ;;  %2490 = vmatprep.subr.bf16.mxu1 %v2489_v33  ;;  %v1476_v15 = vcombine.high %v1292_v36, %v1303_v28  ;;  %v1475_v27 = vcombine.low %v1292_v36, %v1303_v28 }
 0x1fd   : > { %2492 = vmatpush1.bf16.msra.mxu1 %v2491_v8  ;;  %vm4797_vm7 = vcmask 932864  }
 0x1fe   : > { %v1313_v0 = vsel %vm263_vm0, %v4785_v26, %v1195_v14  ;;  %v273_v62 = vsel %vm263_vm0, %v4787_v31, %v262_v57  ;;  %v4789_v26 = vrot.slane %v3875_v23, 4 }
 0x1ff   : > { %v1314_v19 = vsel %vm4786_vm3, %v3845_v21, %v1313_v0  ;;  %v287_v39 = vpop.permute.xlu0 %286  ;;  %v317_v41 = vpop.permute.xlu1 %316  ;;  %v274_v0 = vsel %vm265_vm2, %v3847_v43, %v273_v62  ;;  %v2605_v43 = vld [vmem:[%s2688_s24 + $0x20] sm:$0xff]  ;;  %vm4799_vm3 = vcmask 941056  }
 0x200   : > { %v293_v33 = vrot.slane %v287_v39, 4  ;;  %v323_v8 = vrot.slane %v317_v41, 4  ;;  %v1485_v4 = vcombine.high %v1314_v19, %v1314_v19  ;;  %v2466_v36 = vpack.c.bf16 %v1314_v19, %v1475_v27 }
 0x201   : > { %v1335_v62 = vcombine.low %v2605_v43, %v274_v0 }
 0x202   : > { %v303_v17 = vsel %vm263_vm0, %v4788_v6, %v293_v33  ;;  %v333_v21 = vsel %vm263_vm0, %v4789_v26, %v323_v8  ;;  %v2463_v44 = vpack.c.bf16 %v1485_v4, %v1476_v15  ;;  %v1336_v26 = vcombine.high %v2605_v43, %v274_v0 }
 0x203   : > { %v4246_v31 = vpop.permute.xlu0 %1104  ;;  %v4248_v48 = vpop.permute.xlu1 %1116  ;;  %v304_v7 = vsel %vm4790_vm6, %v3873_v32, %v303_v17  ;;  %v334_v61 = vsel %vm4791_vm8, %v3875_v23, %v333_v21  ;;  %v305_v15 = vsel %vm4792_vm9, %v287_v39, %v293_v33  ;;  %v275_v17 = vsel %vm265_vm2, %v256_v56, %v262_v57  ;;  %vm4796_vm2 = vmmov %vm4771_vm1 }
 0x204   : > { %v1184_v28 = vrot.slane %v4246_v31, 4  ;;  %v1190_v6 = vrot.slane %v4248_v48, 4  ;;  %2465 = vmatprep.subr.msk.bf16.mxu0 %vm3810_vm15, %v2463_v44  ;;  %v1347_v3 = vcombine.low %v304_v7, %v334_v61  ;;  %v1348_v47 = vcombine.high %v304_v7, %v334_v61  ;;  %vm4798_vm1 = vmmov %vm4797_vm7 }
 0x205   : > { %2468 = vmatpush1.bf16.msk.msra.mxu0 %vm3810_vm15, %v2466_v36  ;;  %v335_v61 = vsel %vm4793_vm14, %v317_v41, %v323_v8  ;;  %vm4800_vm6 = vmmov %vm4799_vm3  ;;  %vm4801_vm8 = vcmask 850944   ;;  %vm4802_vm9 = vcmask 842752  }
 0x206   : > { %v1293_v32 = vsel %vm263_vm0, %v1183_v20, %v1184_v28  ;;  %v1304_v27 = vsel %vm263_vm0, %v1189_v24, %v1190_v6  ;;  %v2499_v44 = vpack.c.bf16 %v1348_v47, %v1336_v26  ;;  %v2501_v4 = vpack.c.bf16 %v1347_v3, %v1335_v62  ;;  %vm4803_vm14 = vmmov %vm4801_vm8 }
 0x207   : > { %v4267_v23 = vpop.permute.xlu0 %1128  ;;  %v347_v19 = vpop.permute.xlu1 %346  ;;  %v1294_v20 = vsel %vm4794_vm4, %v4212_v16, %v1293_v32  ;;  %v1305_v24 = vsel %vm4795_vm5, %v4214_v53, %v1304_v27  ;;  %v1349_v39 = vcombine.low %v305_v15, %v335_v61  ;;  %v1337_v16 = vcombine.low %v3731_v52, %v275_v17  ;;  %vm4804_vm4 = vmmov %vm4802_vm9 }
 0x208   : > { %v1196_v7 = vrot.slane %v4267_v23, 4  ;;  %2500 = vmatprep.subr.bf16.mxu0 %v2499_v44  ;;  %2367 = vmatmul.mubr.msk.f32.vlgmr.msra.gmra.mrb[2].mxu0 %vm1645_vm13, %v3852_v2  ;;  %v353_v3 = vrot.slane %v347_v19, 4  ;;  %v1350_v0 = vcombine.high %v305_v15, %v335_v61  ;;  %v1478_v53 = vcombine.high %v1294_v20, %v1305_v24 }
 0x209   : > { %2502 = vmatpush1.bf16.msra.mxu0 %v2501_v4  ;;  %2021 = vmatprep.mubr.f32.mxu0 %v4714_v30  ;;  %v1477_v36 = vcombine.low %v1294_v20, %v1305_v24  ;;  %v2531_v62 = vpack.c.bf16 %v1349_v39, %v1337_v16  ;;  %vm4805_vm5 = vcmask 834560  }
 0x20a   : > { %v1315_v47 = vsel %vm263_vm0, %v1195_v14, %v1196_v7  ;;  %v363_v14 = vsel %vm263_vm0, %v352_v34, %v353_v3  ;;  %v365_v20 = vsel %vm4799_vm3, %v347_v19, %v353_v3  ;;  %vm4817_vm3 = vcmask 719872  }
 0x20b   : > { %v1316_v56 = vsel %vm4796_vm2, %v1127_v58, %v1315_v47  ;;  %v377_v57 = vpop.permute.xlu0 %376  ;;  %v407_v41 = vpop.permute.xlu1 %406  ;;  %v1338_v58 = vcombine.high %v3731_v52, %v275_v17  ;;  %v364_v17 = vsel %vm4800_vm6, %v3946_v55, %v363_v14  ;;  %vm4807_vm2 = vmmov %vm4805_vm5 }
 0x20c   : > { %v383_v33 = vrot.slane %v377_v57, 4  ;;  %v413_v8 = vrot.slane %v407_v41, 4  ;;  %v1486_v21 = vcombine.high %v1316_v56, %v1316_v56  ;;  %v2496_v4 = vpack.c.bf16 %v1316_v56, %v1477_v36 }
 0x20d   : > { %v2529_v52 = vpack.c.bf16 %v1350_v0, %v1338_v58 }
 0x20e   : > { %v393_v43 = vsel %vm263_vm0, %v382_v45, %v383_v33  ;;  %v395_v26 = vsel %vm4797_vm7, %v377_v57, %v383_v33  ;;  %v2493_v44 = vpack.c.bf16 %v1486_v21, %v1478_v53  ;;  %v423_v15 = vsel %vm263_vm0, %v412_v35, %v413_v8 }
 0x20f   : > { %v437_v32 = vpop.permute.xlu0 %436  ;;  %v467_v27 = vpop.permute.xlu1 %466  ;;  %v394_v34 = vsel %vm4798_vm1, %v3948_v29, %v393_v43  ;;  %v1362_v24 = vcombine.high %v365_v20, %v395_v26  ;;  %v425_v47 = vsel %vm4801_vm8, %v407_v41, %v413_v8  ;;  %v424_v56 = vsel %vm4803_vm14, %v3965_v51, %v423_v15 }
 0x210   : > { %v443_v61 = vrot.slane %v437_v32, 4  ;;  %v473_v45 = vrot.slane %v467_v27, 4  ;;  %2495 = vmatprep.subr.msk.bf16.mxu1 %vm3810_vm15, %v2493_v44  ;;  %v1359_v57 = vcombine.low %v364_v17, %v394_v34  ;;  %v1360_v53 = vcombine.high %v364_v17, %v394_v34 }
 0x211   : > { %2498 = vmatpush1.bf16.msk.msra.mxu1 %vm3810_vm15, %v2496_v4  ;;  %v1361_v36 = vcombine.low %v365_v20, %v395_v26  ;;  %v4806_v44 = vrot.slane %v4054_v54, 4  ;;  %v4808_v34 = vrot.slane %v4056_v11, 4  ;;  %vm4809_vm7 = vcmask 900096  }
 0x212   : > { %v453_v35 = vsel %vm263_vm0, %v442_v49, %v443_v61  ;;  %v455_v39 = vsel %vm4802_vm9, %v437_v32, %v443_v61  ;;  %2530 = vmatprep.subr.bf16.mxu1 %v2529_v52  ;;  %v483_v16 = vsel %vm263_vm0, %v472_v1, %v473_v45  ;;  %v485_v1 = vsel %vm4805_vm5, %v467_v27, %v473_v45  ;;  %vm4810_vm1 = vmmov %vm4809_vm7 }
 0x213   : > { %v1374_v29 = vcombine.high %v425_v47, %v455_v39  ;;  %v503_v19 = vpop.permute.xlu0 %502  ;;  %v533_v3 = vpop.permute.xlu1 %532  ;;  %v454_v55 = vsel %vm4804_vm4, %v3967_v10, %v453_v35  ;;  %v1373_v21 = vcombine.low %v425_v47, %v455_v39  ;;  %vm4822_vm9 = vcmask 711680  }
 0x214   : > { %v509_v41 = vrot.slane %v503_v19, 4  ;;  %v539_v33 = vrot.slane %v533_v3, 4  ;;  %v1371_v8 = vcombine.low %v424_v56, %v454_v55  ;;  %v1372_v49 = vcombine.high %v424_v56, %v454_v55  ;;  %2370 = vmatmul.mubr.msk.f32.vlgmr.msra.gmra.mrb[2].mxu1 %vm1645_vm13, %v3852_v2  ;;  %vm4825_vm14 = vmmov %vm4822_vm9 }
 0x215   : > { %v2533_v0 = vpack.c.bf16 %v1374_v29, %v1362_v24  ;;  %2532 = vmatpush1.bf16.msra.mxu1 %v2531_v62  ;;  %v484_v62 = vsel %vm4807_vm2, %v4033_v18, %v483_v16  ;;  %2092 = vmatprep.mubr.f32.mxu1 %v4714_v30  ;;  %v2535_v26 = vpack.c.bf16 %v1373_v21, %v1361_v36  ;;  %vm4826_vm4 = vmmov %vm4822_vm9 }
 0x216   : > { %v521_v51 = vsel %vm511_vm11, %v503_v19, %v509_v41  ;;  %v519_v10 = vsel %vm263_vm0, %v508_v12, %v509_v41  ;;  %v2503_v58 = vpack.c.bf16 %v1372_v49, %v1360_v53  ;;  %v2505_v32 = vpack.c.bf16 %v1371_v8, %v1359_v57  ;;  %vm4827_vm5 = vmmov %vm4826_vm4 }
 0x217   : > { %v563_v14 = vpop.permute.xlu0 %562  ;;  %2534 = vmatprep.subr.bf16.mxu1 %v2533_v0  ;;  %v593_v43 = vpop.permute.xlu1 %592  ;;  %v549_v2 = vsel %vm263_vm0, %v4806_v44, %v539_v33  ;;  %v1385_v15 = vcombine.low %v485_v1, %v521_v51  ;;  %v1386_v12 = vcombine.high %v485_v1, %v521_v51  ;;  %v551_v61 = vsel %vm541_vm12, %v533_v3, %v539_v33  ;;  %vm4829_vm2 = vmmov %vm4826_vm4 }
 0x218   : > { %v569_v4 = vrot.slane %v563_v14, 4  ;;  %2504 = vmatprep.subr.bf16.mxu0 %v2503_v58  ;;  %v599_v45 = vrot.slane %v593_v43, 4  ;;  %v520_v52 = vsel %vm511_vm11, %v4035_v13, %v519_v10  ;;  %v550_v47 = vsel %vm541_vm12, %v4054_v54, %v549_v2 }
 0x219   : > { %2506 = vmatpush1.bf16.msra.mxu0 %v2505_v32  ;;  %2536 = vmatpush1.bf16.msra.mxu1 %v2535_v26  ;;  %v1383_v57 = vcombine.low %v484_v62, %v520_v52  ;;  %v1384_v41 = vcombine.high %v484_v62, %v520_v52  ;;  %v4811_v13 = vrot.slane %v4086_v60, 4  ;;  %vm4812_vm11 = vcmask 809984  }
 0x21a   : > { %v579_v27 = vsel %vm263_vm0, %v4808_v34, %v569_v4  ;;  %v581_v20 = vsel %vm4809_vm7, %v563_v14, %v569_v4  ;;  %v4813_v49 = vrot.slane %v4088_v9, 4  ;;  %v611_v53 = vsel %vm601_vm10, %v593_v43, %v599_v45  ;;  %vm4818_vm6 = vmmov %vm4812_vm11 }
 0x21b   : > { %v1397_v18 = vcombine.low %v551_v61, %v581_v20  ;;  %v1398_v17 = vcombine.high %v551_v61, %v581_v20  ;;  %v623_v30 = vpop.permute.xlu0 %622  ;;  %v653_v24 = vpop.permute.xlu1 %652  ;;  %v580_v35 = vsel %vm4810_vm1, %v4056_v11, %v579_v27  ;;  %v609_v33 = vsel %vm263_vm0, %v4811_v13, %v599_v45  ;;  %vm4830_vm7 = vmmov %vm4829_vm2 }
 0x21c   : > { %v629_v39 = vrot.slane %v623_v30, 4  ;;  %v659_v29 = vrot.slane %v653_v24, 4  ;;  %v1395_v19 = vcombine.low %v550_v47, %v580_v35  ;;  %v1396_v3 = vcombine.high %v550_v47, %v580_v35  ;;  %vm4831_vm1 = vmmov %vm4829_vm2 }
 0x21d   : > { %v2539_v56 = vpack.c.bf16 %v1397_v18, %v1385_v15  ;;  %v2537_v55 = vpack.c.bf16 %v1398_v17, %v1386_v12  ;;  %v4814_v51 = vrot.slane %v4102_v38, 4  ;;  %vm4815_vm12 = vcmask 801792  }
 0x21e   : > { %v641_v8 = vsel %vm4812_vm11, %v623_v30, %v629_v39  ;;  %v639_v54 = vsel %vm263_vm0, %v4813_v49, %v629_v39  ;;  %v2507_v16 = vpack.c.bf16 %v1396_v3, %v1384_v41  ;;  %v2509_v0 = vpack.c.bf16 %v1395_v19, %v1383_v57  ;;  %vm4819_vm8 = vmmov %vm4815_vm12 }
 0x21f   : > { %v683_v21 = vpop.permute.xlu0 %682  ;;  %2538 = vmatprep.subr.bf16.mxu1 %v2537_v55  ;;  %v1011_v11 = vpop.permute.xlu1 %1010  ;;  %v669_v36 = vsel %vm263_vm0, %v4814_v51, %v659_v29  ;;  %v1409_v14 = vcombine.low %v611_v53, %v641_v8  ;;  %v1410_v58 = vcombine.high %v611_v53, %v641_v8  ;;  %v671_v32 = vsel %vm4815_vm12, %v653_v24, %v659_v29  ;;  %vm4833_vm11 = vmmov %vm4831_vm1 }
 0x220   : > { %v689_v10 = vrot.slane %v683_v21, 4  ;;  %2540 = vmatpush1.bf16.msra.mxu1 %v2539_v56  ;;  %2508 = vmatprep.subr.bf16.mxu0 %v2507_v16  ;;  %v610_v1 = vsel %vm601_vm10, %v4086_v60, %v609_v33  ;;  %v4816_v44 = vrot.slane %v4104_v42, 4  ;;  %v1137_v4 = vrot.slane %v1011_v11, 4  ;;  %vm4820_vm10 = vmmov %vm4817_vm3 }
 0x221   : > { %2510 = vmatpush1.bf16.msra.mxu0 %v2509_v0  ;;  %v640_v62 = vsel %vm4818_vm6, %v4088_v9, %v639_v54  ;;  %v670_v34 = vsel %vm4819_vm8, %v4102_v38, %v669_v36  ;;  %v4821_v9 = vrot.slane %v4134_v40, 4  ;;  %v4823_v39 = vrot.slane %v4136_v63, 4  ;;  %vm4835_vm12 = vmmov %vm4831_vm1 }
 0x222   : > { %v699_v2 = vsel %vm263_vm0, %v4816_v44, %v689_v10  ;;  %v701_v43 = vsel %vm4817_vm3, %v683_v21, %v689_v10  ;;  %v1407_v30 = vcombine.low %v610_v1, %v640_v62  ;;  %v1408_v24 = vcombine.high %v610_v1, %v640_v62  ;;  %vm4836_vm3 = vmmov %vm4831_vm1 }
 0x223   : > { %v1421_v26 = vcombine.low %v671_v32, %v701_v43  ;;  %v1422_v15 = vcombine.high %v671_v32, %v701_v43  ;;  %v1023_v12 = vpop.permute.xlu0 %1022  ;;  %v1035_v61 = vpop.permute.xlu1 %1034  ;;  %v700_v60 = vsel %vm4820_vm10, %v4104_v42, %v699_v2  ;;  %v1207_v47 = vsel %vm263_vm0, %v4821_v9, %v1137_v4  ;;  %vm4837_vm6 = vmmov %vm4831_vm1 }
 0x224   : > { %v1143_v27 = vrot.slane %v1023_v12, 4  ;;  %v1149_v20 = vrot.slane %v1035_v61, 4  ;;  %v1419_v45 = vcombine.low %v670_v34, %v700_v60  ;;  %v1420_v52 = vcombine.high %v670_v34, %v700_v60  ;;  %vm4839_vm8 = vmmov %vm4831_vm1 }
 0x225   : > { %v2543_v18 = vpack.c.bf16 %v1421_v26, %v1409_v14  ;;  %v2541_v17 = vpack.c.bf16 %v1422_v15, %v1410_v58  ;;  %v4824_v42 = vrot.slane %v4150_v46, 4  ;;  %v1209_v57 = vsel %vm4825_vm14, %v1011_v11, %v1137_v4  ;;  %vm4840_vm10 = vmmov %vm4831_vm1 }
 0x226   : > { %v1220_v35 = vsel %vm4822_vm9, %v1023_v12, %v1143_v27  ;;  %v1218_v38 = vsel %vm263_vm0, %v4823_v39, %v1143_v27  ;;  %v2511_v56 = vpack.c.bf16 %v1420_v52, %v1408_v24  ;;  %v2513_v55 = vpack.c.bf16 %v1419_v45, %v1407_v30  ;;  %vm4842_vm9 = vmmov %vm4831_vm1 }
 0x227   : > { %v1229_v29 = vsel %vm263_vm0, %v4824_v42, %v1149_v20  ;;  %v1047_v19 = vpop.permute.xlu0 %1046  ;;  %2542 = vmatprep.subr.bf16.mxu1 %v2541_v17  ;;  %v1433_v33 = vcombine.low %v1209_v57, %v1220_v35  ;;  %v1434_v8 = vcombine.high %v1209_v57, %v1220_v35  ;;  %v1231_v49 = vsel %vm4826_vm4, %v1035_v61, %v1149_v20  ;;  %vm4843_vm14 = vmmov %vm4831_vm1 }
 0x228   : > { %v1059_v3 = vpop.permute.xlu1 %1058  ;;  %v1155_v41 = vrot.slane %v1047_v19, 4  ;;  %2544 = vmatpush1.bf16.msra.mxu1 %v2543_v18  ;;  %2512 = vmatprep.subr.bf16.mxu0 %v2511_v56  ;;  %v1208_v54 = vsel %vm4827_vm5, %v4134_v40, %v1207_v47  ;;  %v4828_v21 = vrot.slane %v4152_v22, 4  ;;  %v1219_v11 = vsel %vm4830_vm7, %v4136_v63, %v1218_v38  ;;  %vm4844_vm4 = vmmov %vm4831_vm1 }
 0x229   : > { %v1161_v13 = vrot.slane %v1059_v3, 4  ;;  %2514 = vmatpush1.bf16.msra.mxu0 %v2513_v55  ;;  %v1230_v53 = vsel %vm4831_vm1, %v4150_v46, %v1229_v29  ;;  %v4832_v10 = vrot.slane %v4182_v50, 4  ;;  %v1431_v62 = vcombine.low %v1208_v54, %v1219_v11  ;;  %vm4845_vm5 = vmmov %vm4831_vm1 }
 0x22a   : > { %v1240_v16 = vsel %vm263_vm0, %v4828_v21, %v1155_v41  ;;  %v1242_v0 = vsel %vm4829_vm2, %v1047_v19, %v1155_v41  ;;  %v1432_v26 = vcombine.high %v1208_v54, %v1219_v11  ;;  %v4834_v46 = vrot.slane %v4184_v5, 4  ;;  %vm4846_vm2 = vmmov %vm4831_vm1 }
 0x22b   : > { %v1445_v51 = vcombine.low %v1231_v49, %v1242_v0  ;;  %v1446_v36 = vcombine.high %v1231_v49, %v1242_v0  ;;  %v1251_v14 = vsel %vm263_vm0, %v4832_v10, %v1161_v13  ;;  %v1071_v40 = vpop.permute.xlu0 %1070  ;;  %v1241_v32 = vsel %vm4833_vm11, %v4152_v22, %v1240_v16  ;;  %vm4847_vm7 = vmmov %vm4831_vm1 }
 0x22c   : > { %v1083_v58 = vpop.permute.xlu1 %1082  ;;  %v1167_v1 = vrot.slane %v1071_v40, 4  ;;  %v1443_v2 = vcombine.low %v1230_v53, %v1241_v32  ;;  %v1444_v43 = vcombine.high %v1230_v53, %v1241_v32  ;;  %v1253_v61 = vsel %vm4836_vm3, %v1059_v3, %v1161_v13  ;;  %vm4848_vm11 = vmmov %vm4831_vm1 }
 0x22d   : > { %v1173_v44 = vrot.slane %v1083_v58, 4  ;;  %v2547_v4 = vpack.c.bf16 %v1445_v51, %v1433_v33  ;;  %v2545_v63 = vpack.c.bf16 %v1446_v36, %v1434_v8  ;;  %v1252_v20 = vsel %vm4837_vm6, %v4182_v50, %v1251_v14 }
 0x22e   : > { %v1262_v15 = vsel %vm263_vm0, %v4834_v46, %v1167_v1  ;;  %v1264_v12 = vsel %vm4835_vm12, %v1071_v40, %v1167_v1  ;;  %v2515_v22 = vpack.c.bf16 %v1444_v43, %v1432_v26  ;;  %v2517_v27 = vpack.c.bf16 %v1443_v2, %v1431_v62  ;;  %vm4849_vm12 = vmmov %vm4831_vm1 }
 0x22f   : > { %v1095_v34 = vpop.permute.xlu0 %1094  ;;  %2546 = vmatprep.subr.bf16.mxu1 %v2545_v63  ;;  %v4838_v45 = vrot.slane %v4198_v59, 4  ;;  %v1263_v30 = vsel %vm4839_vm8, %v4184_v5, %v1262_v15  ;;  %v1457_v24 = vcombine.low %v1253_v61, %v1264_v12  ;;  %v1275_v9 = vsel %vm4840_vm10, %v1083_v58, %v1173_v44 }
 0x230   : > { %v1107_v60 = vpop.permute.xlu1 %1106  ;;  %v1179_v18 = vrot.slane %v1095_v34, 4  ;;  %2548 = vmatpush1.bf16.msra.mxu1 %v2547_v4  ;;  %2516 = vmatprep.subr.bf16.mxu0 %v2515_v22  ;;  %v1455_v47 = vcombine.low %v1252_v20, %v1263_v30  ;;  %v1456_v35 = vcombine.high %v1252_v20, %v1263_v30  ;;  %v1458_v39 = vcombine.high %v1253_v61, %v1264_v12 }
 0x231   : > { %v1273_v52 = vsel %vm263_vm0, %v4838_v45, %v1173_v44  ;;  %v1185_v17 = vrot.slane %v1107_v60, 4  ;;  %v4841_v38 = vrot.slane %v4200_v37, 4  ;;  %2518 = vmatpush1.bf16.msra.mxu0 %v2517_v27  ;;  %v2141_v15 = vlaneseq }
 0x232   : > { %v1286_v42 = vsel %vm4842_vm9, %v1095_v34, %v1179_v18  ;;  %v1274_v55 = vsel %vm4843_vm14, %v4198_v59, %v1273_v52  ;;  %v2137_v52 = vld [vmem:[%s4549_s3] sm:$0xff] }
 0x233   : > { %v1284_v50 = vsel %vm263_vm0, %v4841_v38, %v1179_v18  ;;  %v1295_v29 = vsel %vm263_vm0, %v1184_v28, %v1185_v17  ;;  %v1469_v19 = vcombine.low %v1275_v9, %v1286_v42  ;;  %v1470_v5 = vcombine.high %v1275_v9, %v1286_v42  ;;  %v1119_v3 = vpop.permute.xlu0 %1118 }
 0x234   : > { %v1131_v56 = vpop.permute.xlu1 %1130  ;;  %v1285_v57 = vsel %vm4844_vm4, %v4200_v37, %v1284_v50  ;;  %v1191_v41 = vrot.slane %v1119_v3, 4  ;;  %v1296_v54 = vsel %vm4845_vm5, %v4246_v31, %v1295_v29  ;;  %v1297_v28 = vsel %vm4846_vm2, %v1107_v60, %v1185_v17 }
 0x235   : > { %v1197_v13 = vrot.slane %v1131_v56, 4  ;;  %v1467_v33 = vcombine.low %v1274_v55, %v1285_v57  ;;  %v1468_v8 = vcombine.high %v1274_v55, %v1285_v57  ;;  %v2551_v49 = vpack.c.bf16 %v1469_v19, %v1457_v24 }
 0x236   : > { %v2549_v21 = vpack.c.bf16 %v1470_v5, %v1458_v39  ;;  %v1306_v16 = vsel %vm263_vm0, %v1190_v6, %v1191_v41  ;;  %v1308_v59 = vsel %vm4847_vm7, %v1119_v3, %v1191_v41  ;;  %v4446_v12 = vshrl.u32 %v2141_v15, 7  ;;  %v2138_v15 = vld [vmem:[%s4549_s3 + $0x8] sm:$0xf] }
 0x237   : > { %v1317_v37 = vsel %vm263_vm0, %v1196_v7, %v1197_v13  ;;  %v1319_v0 = vsel %vm4831_vm1, %v1131_v56, %v1197_v13  ;;  %v1307_v11 = vsel %vm4848_vm11, %v4248_v48, %v1306_v16  ;;  %v1481_v53 = vcombine.low %v1297_v28, %v1308_v59  ;;  %v2606_v48 = vld [vmem:[%s4547_s1] sm:$0xff] }
 0x238   : > { %v1482_v31 = vcombine.high %v1297_v28, %v1308_v59  ;;  %v1318_v51 = vsel %vm4849_vm12, %v4267_v23, %v1317_v37  ;;  %2550 = vmatprep.subr.bf16.mxu1 %v2549_v21  ;;  %v1479_v36 = vcombine.low %v1296_v54, %v1307_v11  ;;  %v1488_v10 = vcombine.high %v1319_v0, %v1319_v0 }
 0x239   : > { %v2519_v6 = vpack.c.bf16 %v1468_v8, %v1456_v35  ;;  %2552 = vmatpush1.bf16.msra.mxu1 %v2551_v49  ;;  %v2521_v14 = vpack.c.bf16 %v1467_v33, %v1455_v47  ;;  %v2556_v40 = vpack.c.bf16 %v1319_v0, %v1481_v53  ;;  %v1480_v58 = vcombine.high %v1296_v54, %v1307_v11 }
 0x23a   : > { %v1487_v32 = vcombine.high %v1318_v51, %v1318_v51  ;;  %v2553_v7 = vpack.c.bf16 %v1488_v10, %v1482_v31  ;;  %v2526_v1 = vpack.c.bf16 %v1318_v51, %v1479_v36  ;;  %v4450_v60 = vstv %s2099_s30 }
 0x23b   : > { %2520 = vmatprep.subr.bf16.mxu0 %v2519_v6  ;;  %v2143_v22 = vsub.s32 0, %v4446_v12  ;;  %v2147_v27 = vsub.s32 1, %v4446_v12  ;;  %v2151_v24 = vsub.s32 2, %v4446_v12  ;;  %v2155_v29 = vsub.s32 3, %v4446_v12 }
 0x23c   : > { %2522 = vmatpush1.bf16.msra.mxu0 %v2521_v14  ;;  %v2523_v44 = vpack.c.bf16 %v1487_v32, %v1480_v58  ;;  %2555 = vmatprep.subr.msk.bf16.mxu1 %vm3810_vm15, %v2553_v7  ;;  %v2159_v33 = vsub.s32 4, %v4446_v12  ;;  %v2163_v37 = vsub.s32 5, %v4446_v12  ;;  %v2167_v10 = vsub.s32 6, %v4446_v12 }
 0x23d   : > { %2558 = vmatpush1.bf16.msk.msra.mxu1 %vm3810_vm15, %v2556_v40  ;;  %v2144_v17 = vrot.slane %v2137_v52, %v2143_v22  ;;  %v2148_v30 = vrot.slane %v2137_v52, %v2147_v27  ;;  %v2152_v42 = vrot.slane %v2137_v52, %v2151_v24  ;;  %v2156_v41 = vrot.slane %v2137_v52, %v2155_v29 }
 0x23e   : > { %2525 = vmatprep.subr.msk.bf16.mxu0 %vm3810_vm15, %v2523_v44  ;;  %v2160_v59 = vrot.slane %v2137_v52, %v2159_v33  ;;  %v2164_v40 = vrot.slane %v2137_v52, %v2163_v37  ;;  %vm2223_vm7 = vcmask 261120  }
 0x240   : > { %2528 = vmatpush1.bf16.msk.msra.mxu0 %vm3810_vm15, %v2526_v1  ;;  %2376 = vmatmul.mubr.msk.f32.vlgmr.msra.gmra.mrb[4].mxu1 %vm1645_vm13, %v2606_v48  ;;  %v2171_v1 = vsub.s32 7, %v4446_v12 }
 0x243   : > { %2373 = vmatmul.mubr.msk.f32.vlgmr.msra.gmra.mrb[4].mxu0 %vm1645_vm13, %v2606_v48  ;;  %v2168_v48 = vrot.slane %v2137_v52, %v2167_v10 }
 0x244   : > { %v4444_v25 = vpop.permute.xlu0 %1324 }
 0x275   : > { %v1739_v23 = vpop.f32.mrb[0].mxu0 }
 0x276   : > { %v1741_v2 = vpop.f32.mrb[1].mxu0  ;;  %v1740_v61 = vadd.f32 %v1739_v23, %v4444_v25 }
 0x277   : > { %v1742_v34 = vadd.f32 %v1741_v2, %v4444_v25 }
 0x278   : > { %v2113_v20 = vmul.f32 %v4450_v60, %v1740_v61  ;;  %vm2100_vm0 = vcmp.ge.f32.partialorder %v1740_v61, 0.0 }
 0x279   : > { %v2114_v45 = vmul.f32 %v4450_v60, %v1742_v34  ;;  %vm2101_vm15 = vcmp.ge.f32.partialorder %v1742_v34, 0.0 }
 0x27a   : > { %v4465_v9 = vsel %vm2100_vm0, %v1740_v61, %v2113_v20 }
 0x27b   : > { %v4467_v47 = vsel %vm2101_vm15, %v1742_v34, %v2114_v45  ;;  %v2201_v38 = vmul.f32 %v2144_v17, %v4465_v9 }
 0x27c   : > { %v2202_v50 = vmul.f32 %v2148_v30, %v4467_v47  ;;  %v2184_v30 = vrot.slane %v2138_v15, %v2151_v24 }
 0x27d   : > { %v2228_v56 = vmul.f32 %v2201_v38, %v2201_v38 }
 0x27e   : > { %v2229_v55 = vmul.f32 %v2202_v50, %v2202_v50  ;;  %v2213_v54 = vadd.f32 %v2202_v50, %v2201_v38  ;;  %v2176_v38 = vrot.slane %v2138_v15, %v2143_v22 }
 0x280   : > { %v2240_v28 = vadd.f32 %v2229_v55, %v2228_v56 }
 0x281   : > { %v1810_v43 = vpop.f32.mrb[0].mxu1 }
 0x282   : > { %v1812_v4 = vpop.f32.mrb[1].mxu1  ;;  %v1811_v18 = vadd.f32 %v1810_v43, %v4444_v25 }
 0x283   : > { %v1813_v39 = vadd.f32 %v1812_v4, %v4444_v25 }
 0x284   : > { %v2115_v35 = vmul.f32 %v4450_v60, %v1811_v18  ;;  %vm2102_vm13 = vcmp.ge.f32.partialorder %v1811_v18, 0.0 }
 0x285   : > { %v2116_v5 = vmul.f32 %v4450_v60, %v1813_v39  ;;  %vm2103_vm3 = vcmp.ge.f32.partialorder %v1813_v39, 0.0 }
 0x286   : > { %v4476_v19 = vsel %vm2102_vm13, %v1811_v18, %v2115_v35 }
 0x287   : > { %v2203_v57 = vmul.f32 %v2152_v42, %v4476_v19  ;;  %v4481_v13 = vsel %vm2103_vm3, %v1813_v39, %v2116_v5  ;;  %v2188_v42 = vrot.slane %v2138_v15, %v2155_v29  ;;  %v2180_v29 = vrot.slane %v2138_v15, %v2147_v27 }
 0x288   : > { %v2204_v16 = vmul.f32 %v2156_v41, %v4481_v13 }
 0x289   : > { %v2230_v21 = vmul.f32 %v2203_v57, %v2203_v57  ;;  %v2214_v31 = vadd.f32 %v2213_v54, %v2203_v57 }
 0x28a   : > { %v2231_v36 = vmul.f32 %v2204_v16, %v2204_v16 }
 0x28b   : > { %v2241_v51 = vadd.f32 %v2240_v28, %v2230_v21  ;;  %v2215_v7 = vadd.f32 %v2214_v31, %v2204_v16 }
 0x28d   : > { %v2242_v44 = vadd.f32 %v2241_v51, %v2231_v36 }
 0x2db   : > { %v1881_v63 = vpop.f32.mrb[2].mxu0 }
 0x2dc   : > { %v1883_v62 = vpop.f32.mrb[3].mxu0  ;;  %v1882_v3 = vadd.f32 %v1881_v63, %v4444_v25 }
 0x2dd   : > { %v1884_v49 = vadd.f32 %v1883_v62, %v4444_v25  ;;  %v2172_v62 = vrot.slane %v2137_v52, %v2171_v1 }
 0x2de   : > { %v2117_v8 = vmul.f32 %v4450_v60, %v1882_v3  ;;  %vm2104_vm6 = vcmp.ge.f32.partialorder %v1882_v3, 0.0 }
 0x2df   : > { %v2118_v53 = vmul.f32 %v4450_v60, %v1884_v49  ;;  %vm2105_vm8 = vcmp.ge.f32.partialorder %v1884_v49, 0.0 }
 0x2e0   : > { %v4489_v11 = vsel %vm2104_vm6, %v1882_v3, %v2117_v8 }
 0x2e1   : > { %v2205_v14 = vmul.f32 %v2160_v59, %v4489_v11  ;;  %v4496_v32 = vsel %vm2105_vm8, %v1884_v49, %v2118_v53 }
 0x2e2   : > { %v2206_v43 = vmul.f32 %v2164_v40, %v4496_v32 }
 0x2e3   : > { %v2232_v2 = vmul.f32 %v2205_v14, %v2205_v14  ;;  %v2216_v63 = vadd.f32 %v2215_v7, %v2205_v14 }
 0x2e4   : > { %v2233_v34 = vmul.f32 %v2206_v43, %v2206_v43 }
 0x2e5   : > { %v2243_v61 = vadd.f32 %v2242_v44, %v2232_v2  ;;  %v2217_v45 = vadd.f32 %v2216_v63, %v2206_v43 }
 0x2e7   : > { %v1952_v26 = vpop.f32.mrb[2].mxu1  ;;  %v2244_v5 = vadd.f32 %v2243_v61, %v2233_v34 }
 0x2e8   : > { %v1954_v46 = vpop.f32.mrb[3].mxu1  ;;  %v1953_v0 = vadd.f32 %v1952_v26, %v4444_v25 }
 0x2e9   : > { %v1955_v6 = vadd.f32 %v1954_v46, %v4444_v25 }
 0x2ea   : > { %v2119_v58 = vmul.f32 %v4450_v60, %v1953_v0  ;;  %vm2106_vm10 = vcmp.ge.f32.partialorder %v1953_v0, 0.0 }
 0x2eb   : > { %v2120_v23 = vmul.f32 %v4450_v60, %v1955_v6  ;;  %vm2107_vm9 = vcmp.ge.f32.partialorder %v1955_v6, 0.0 }
 0x2ec   : > { %v4501_v4 = vsel %vm2106_vm10, %v1953_v0, %v2119_v58 }
 0x2ed   : > { %v2207_v26 = vmul.f32 %v2168_v48, %v4501_v4  ;;  %v4504_v46 = vsel %vm2107_vm9, %v1955_v6, %v2120_v23 }
 0x2ee   : > { %v2208_v18 = vmul.f32 %v2172_v62, %v4504_v46 }
 0x2ef   : > { %v2234_v35 = vmul.f32 %v2207_v26, %v2207_v26  ;;  %v2218_v3 = vadd.f32 %v2217_v45, %v2207_v26 }
 0x2f0   : > { %v2235_v33 = vmul.f32 %v2208_v18, %v2208_v18 }
 0x2f1   : > { %v2245_v8 = vadd.f32 %v2244_v5, %v2234_v35  ;;  %v2219_v16 = vadd.f32 %v2218_v3, %v2208_v18 }
 0x2f3   : > { %v2246_v53 = vadd.f32 %v2245_v8, %v2235_v33 }
 0x313   : > { %v2094_v20 = vpop.f32.mrb[4].mxu1 }
 0x314   : > { %v2095_v17 = vadd.f32 %v2094_v20, %v4444_v25  ;;  %v2096_v52 = vpop.f32.mrb[5].mxu1 }
 0x315   : > { %v2097_v50 = vadd.f32 %v2096_v52, %v4444_v25 }
 0x316   : > { %v2023_v39 = vpop.f32.mrb[4].mxu0  ;;  %v2123_v56 = vmul.f32 %v4450_v60, %v2095_v17  ;;  %vm2110_vm14 = vcmp.ge.f32.partialorder %v2095_v17, 0.0 }
 0x317   : > { %v2024_v55 = vadd.f32 %v2023_v39, %v4444_v25  ;;  %v2025_v57 = vpop.f32.mrb[5].mxu0  ;;  %vm2111_vm4 = vcmp.ge.f32.partialorder %v2097_v50, 0.0  ;;  %v2124_v24 = vmul.f32 %v4450_v60, %v2097_v50 }
 0x318   : > { %v2026_v41 = vadd.f32 %v2025_v57, %v4444_v25  ;;  %v2135_v28 = vsel %vm2110_vm14, %v2095_v17, %v2123_v56 }
 0x319   : > { %vm2108_vm5 = vcmp.ge.f32.partialorder %v2024_v55, 0.0  ;;  %v2121_v22 = vmul.f32 %v4450_v60, %v2024_v55  ;;  %v4523_v49 = vsel %vm2111_vm4, %v2097_v50, %v2124_v24  ;;  %v2211_v31 = vmul.f32 %v2184_v30, %v2135_v28 }
 0x31a   : > { %vm2109_vm2 = vcmp.ge.f32.partialorder %v2026_v41, 0.0  ;;  %v2122_v54 = vmul.f32 %v4450_v60, %v2026_v41  ;;  %v2212_v25 = vmul.f32 %v2188_v42, %v4523_v49 }
 0x31b   : > { %v2133_v21 = vsel %vm2108_vm5, %v2024_v55, %v2121_v22  ;;  %v2238_v40 = vmul.f32 %v2211_v31, %v2211_v31 }
 0x31c   : > { %v2209_v59 = vmul.f32 %v2176_v38, %v2133_v21  ;;  %v2134_v37 = vsel %vm2109_vm2, %v2026_v41, %v2122_v54  ;;  %v2239_v6 = vmul.f32 %v2212_v25, %v2212_v25  ;;  %v2224_v58 = vsel %vm2223_vm7, %v2212_v25, 0.0 }
 0x31d   : > { %v2210_v0 = vmul.f32 %v2180_v29, %v2134_v37 }
 0x31e   : > { %v2220_v51 = vadd.f32 %v2219_v16, %v2209_v59  ;;  %v2236_v36 = vmul.f32 %v2209_v59, %v2209_v59  ;;  %v2250_v44 = vsel %vm2223_vm7, %v2239_v6, 0.0 }
 0x31f   : > { %v2237_v12 = vmul.f32 %v2210_v0, %v2210_v0 }
 0x320   : > { %v2221_v27 = vadd.f32 %v2220_v51, %v2210_v0  ;;  %v2247_v10 = vadd.f32 %v2246_v53, %v2236_v36 }
 0x322   : > { %v2222_v14 = vadd.f32 %v2221_v27, %v2211_v31  ;;  %v2248_v60 = vadd.f32 %v2247_v10, %v2237_v12 }
 0x324   : > { %v2225_v7 = vadd.f32 %v2224_v58, %v2222_v14  ;;  %v2249_v1 = vadd.f32 %v2248_v60, %v2238_v40 }
 0x326   : > { %2226 = vadd.xlane.f32.xlu1 %v2225_v7  ;;  %v2251_v48 = vadd.f32 %v2250_v44, %v2249_v1 }
 0x328   : > { %2252 = vadd.xlane.f32.xlu0 %v2251_v48 }
 0x3b3   : > { %v2227_v23 = vpop.xlane.xlu1 %2226 }
 0x3b4   : > { %v2254_v2 = vmul.f32 0.001, %v2227_v23 }
 0x3b5   : > { %v2253_v43 = vpop.xlane.xlu0 %2252 }
 0x3b6   : > { %v2255_v63 = vmul.f32 0.001, %v2253_v43  ;;  %v2256_v62 = vmul.f32 %v2254_v2, %v2254_v2  ;;  %v2259_v34 = vsub.f32 %v4465_v9, %v2254_v2  ;;  %v2260_v20 = vsub.f32 %v4467_v47, %v2254_v2 }
 0x3b7   : > { %v2261_v45 = vsub.f32 %v4476_v19, %v2254_v2  ;;  %v2262_v18 = vsub.f32 %v4481_v13, %v2254_v2  ;;  %v2263_v17 = vsub.f32 %v4489_v11, %v2254_v2  ;;  %v2264_v30 = vsub.f32 %v4496_v32, %v2254_v2 }
 0x3b8   : > { %v2257_v26 = vsub.f32 %v2255_v63, %v2256_v62  ;;  %v2265_v52 = vsub.f32 %v4501_v4, %v2254_v2  ;;  %v2266_v35 = vsub.f32 %v4504_v46, %v2254_v2  ;;  %v2267_v9 = vsub.f32 %v2133_v21, %v2254_v2 }
 0x3b9   : > { %v2268_v38 = vsub.f32 %v2134_v37, %v2254_v2  ;;  %v2269_v47 = vsub.f32 %v2135_v28, %v2254_v2  ;;  %v2270_v19 = vsub.f32 %v4523_v49, %v2254_v2 }
 0x3ba   : > { %v2258_v15 = vmax.f32 %v2257_v26, 0.0 }
 0x3bc   : > { %v2271_v61 = vadd.f32 1e-05, %v2258_v15 }
 0x3be   : > { %2596 = vrsqrt.f32 %v2271_v61 }
 0x3c8   : > { %v2597_v39 = vpop.eup %2596 }
 0x3c9   : > { %v2273_v50 = vmul.f32 %v2597_v39, %v2259_v34  ;;  %v2274_v13 = vmul.f32 %v2597_v39, %v2260_v20  ;;  %v2275_v42 = vmul.f32 %v2597_v39, %v2261_v45  ;;  %v2276_v11 = vmul.f32 %v2597_v39, %v2262_v18 }
 0x3ca   : > { %v2277_v5 = vmul.f32 %v2597_v39, %v2263_v17  ;;  %v2278_v32 = vmul.f32 %v2597_v39, %v2264_v30  ;;  %v2279_v3 = vmul.f32 %v2597_v39, %v2265_v52  ;;  %v2280_v4 = vmul.f32 %v2597_v39, %v2266_v35 }
 0x3cb   : > { %v2281_v56 = vmul.f32 %v2597_v39, %v2267_v9  ;;  %v2282_v46 = vmul.f32 %v2597_v39, %v2268_v38  ;;  %v2283_v55 = vmul.f32 %v2597_v39, %v2269_v47  ;;  %v2284_v57 = vmul.f32 %v2597_v39, %v2270_v19  ;;  %2285 = vst [vmem:[%s225_s21] sm:$0xff] %v2273_v50 }
 0x3cc   : > { %2286 = vst [vmem:[%s225_s21 + $0x8] sm:$0xff] %v2274_v13  ;;  %2287 = vst [vmem:[%s225_s21 + $0x10] sm:$0xff] %v2275_v42 }
 0x3cd   : > { %2288 = vst [vmem:[%s225_s21 + $0x18] sm:$0xff] %v2276_v11  ;;  %2289 = vst [vmem:[%s225_s21 + $0x20] sm:$0xff] %v2277_v5 }
 0x3ce   : > { %2290 = vst [vmem:[%s225_s21 + $0x28] sm:$0xff] %v2278_v32  ;;  %2291 = vst [vmem:[%s225_s21 + $0x30] sm:$0xff] %v2279_v3 }
 0x3cf   : > { %2292 = vst [vmem:[%s225_s21 + $0x38] sm:$0xff] %v2280_v4  ;;  %2293 = vst [vmem:[%s225_s21 + $0x40] sm:$0xff] %v2281_v56 }
 0x3d0   : > { %2294 = vst [vmem:[%s225_s21 + $0x48] sm:$0xff] %v2282_v46  ;;  %2295 = vst [vmem:[%s225_s21 + $0x50] sm:$0xff] %v2283_v55 }
 0x3d1   : > { %2296 = vst.msk [vmem:[%s225_s21 + $0x58] sm:$0xff] %vm2223_vm7, %v2284_v57 }
 0x3d2 PF: > { %s16_s20 = sadd.s32 1, %s2613_s20  }
 0x3d3   : > { %p13_p4 = scmp.ge.s32.totalorder %s16_s20, 4  }
 0x3d5   :  { %15 = sbr.rel (!%p13_p4) target bundleno = 2 (0x2), region = 70 }

</bundles_post_ra>
